<compile_context>
chip_gen: v5e
topology: v5e:2x2
jax: 0.10.0
libtpu: 0.0.40
codegen_flags: <defaults>
</compile_context>

<pallas_src>
import numpy as np
import jax
import jax.numpy as jnp
from jax.experimental import pallas as pl
from jax.experimental.pallas import tpu as pltpu

# ----- small, structure-consistent configuration -----
B = 2          # batch
CIN = 4        # inChannel (EEG electrodes)
T = 128        # time samples
NCLASS = 4     # outClass
F1 = 8
KE = 16        # first temporal kernel width
D = 2
F2 = F1 * D    # 16
POOL = 4       # avg-pool factor (applied twice)
HID = 8        # hidden width of CDIL part
KS = 3
KD = 16        # second depthwise temporal kernel width (fixed in module)
T1 = T // POOL          # 32
T2 = T1 // POOL         # 8
BT = B * T              # 256   (lane extent, stage 1)
BT1 = B * T1            # 64
BT2 = B * T2            # 16
EPS = 1e-5
KH1 = KE // 2 - 1       # 7  (left zero-pad, stage 1)
KH2 = KD // 2 - 1       # 7  (left zero-pad, stage 2)

# ----- parameter-slab row offsets (all multiples of 8) -----
_R_W2 = 0      # (16, 4)
_R_W1E = 16    # (16, 16)
_R_BE1 = 32    # (16, 1)
_R_BE2 = 48    # (16, 1)
_R_PM1 = 64    # (16, 16)
_R_PP1 = 80    # (16, 16)
_R_PM2 = 96    # (16, 16)
_R_PP2 = 112   # (16, 16)
_R_WC1 = 128   # (8, 48)
_R_WC2 = 136   # (8, 24)
_R_WR1 = 144   # (8, 16)
_R_BC1 = 152   # (8, 1)
_R_BR1 = 160   # (8, 1)
_R_BC2 = 168   # (8, 1)
_R_M = 176     # (16, 2)
_R_WA = 192    # (4, 16)
_R_WB = 200    # (4, 8)
_R_BO = 208    # (4, 1)
SLAB_ROWS = 216
SLAB_COLS = 48


def _elu(v):
    return jnp.where(v > 0, v, jnp.exp(jnp.minimum(v, 0.0)) - 1.0)


# ======================= fused forward kernel ==========================
def eeg_cdilnet_kernel(x_ref, slab_ref, aflat_ref, p1_ref, p2_ref, o_ref):
    sl = slab_ref[...]                                    # (216, 48) f32
    x = x_ref[...]                                        # (CIN, B*T)

    w2 = sl[_R_W2:_R_W2 + F2, 0:CIN]                      # (16, 4)
    w1e = sl[_R_W1E:_R_W1E + F2, 0:KE]                    # (16, 16)
    beff1 = sl[_R_BE1:_R_BE1 + F2, 0:1]                   # (16, 1)
    beff2 = sl[_R_BE2:_R_BE2 + F2, 0:1]                   # (16, 1)

    # -------- EEGNet stage 1 --------
    # spatial (grouped) conv applied first; it commutes with the temporal conv
    # once the BatchNorm affines are folded (scale into w1e, shift into beff1).
    xc = jnp.dot(w2, x, preferred_element_type=jnp.float32)          # (F2, B*T)

    lane = jax.lax.broadcasted_iota(jnp.int32, (F2, BT), 1)
    tmod = lane & (T - 1)                                 # time index within a batch block
    acc = jnp.zeros((F2, BT), jnp.float32)
    for k in range(KE):                                   # zero-padded temporal conv, 16 taps
        rolled = pltpu.roll(xc, shift=(KH1 - k) % BT, axis=1)
        valid = (tmod >= KH1 - k) & (tmod <= T - 1 + KH1 - k)
        acc = acc + w1e[:, k:k + 1] * jnp.where(valid, rolled, 0.0)
    u1 = _elu(acc + beff1)                                # (F2, B*T)

    # avg-pool by 4 (per batch block); pool matrix is bf16, right-padded to 128
    # lanes so the result is already a full-lane-tile buffer for the rolls below.
    y1p = jnp.dot(u1.astype(jnp.bfloat16), p1_ref[...],
                  preferred_element_type=jnp.float32)     # (F2, 128); lanes >= 64 are 0

    # -------- EEGNet stage 2 (depthwise(16) + pointwise + BN3 folded) --------
    lane1 = jax.lax.broadcasted_iota(jnp.int32, (F2, T), 1)
    t1 = lane1 & (T1 - 1)
    in_valid = lane1 < BT1
    cols = []
    for k in range(KD):                                   # zero-padded shifted copies (im2col)
        rolled = pltpu.roll(y1p, shift=(KH2 - k) % T, axis=1)
        valid = (t1 >= KH2 - k) & (t1 <= T1 - 1 + KH2 - k) & in_valid
        cols.append(jnp.where(valid, rolled, 0.0))
    xcol = jnp.concatenate(cols, axis=0)                  # (KD*F2, 128)
    u2 = _elu(jnp.dot(aflat_ref[...], xcol,
                      preferred_element_type=jnp.float32) + beff2)    # (F2, 128)

    # second avg-pool by 4 -> CDIL input (channel-major, lanes = b*T2 + t)
    ic = jnp.dot(u2[:, 0:BT1], p2_ref[...], preferred_element_type=jnp.float32)  # (F2, 16)

    pm1 = sl[_R_PM1:_R_PM1 + BT2, 0:BT2]
    pp1 = sl[_R_PP1:_R_PP1 + BT2, 0:BT2]
    pm2 = sl[_R_PM2:_R_PM2 + BT2, 0:BT2]
    pp2 = sl[_R_PP2:_R_PP2 + BT2, 0:BT2]
    wc1 = sl[_R_WC1:_R_WC1 + HID, 0:KS * F2]              # (8, 48)
    wc2 = sl[_R_WC2:_R_WC2 + HID, 0:KS * HID]             # (8, 24)
    wr1 = sl[_R_WR1:_R_WR1 + HID, 0:F2]
    bc1 = sl[_R_BC1:_R_BC1 + HID, 0:1]
    br1 = sl[_R_BR1:_R_BR1 + HID, 0:1]
    bc2 = sl[_R_BC2:_R_BC2 + HID, 0:1]

    # -------- CDIL block 1 (dilation 1, circular within each batch's 8 steps) --------
    icm = jnp.dot(ic, pm1, preferred_element_type=jnp.float32)        # shift -1
    icp = jnp.dot(ic, pp1, preferred_element_type=jnp.float32)        # shift +1
    taps1 = jnp.concatenate([icm, ic, icp], axis=0)                   # (3*F2, 16)
    c1 = jnp.dot(wc1, taps1, preferred_element_type=jnp.float32) + bc1
    r1 = jnp.dot(wr1, ic, preferred_element_type=jnp.float32) + br1
    h1 = jnp.maximum(c1, 0.0) + r1                                    # (HID, 16)

    # -------- CDIL block 2 (dilation 2, identity residual) --------
    h1m = jnp.dot(h1, pm2, preferred_element_type=jnp.float32)        # shift -2
    h1p = jnp.dot(h1, pp2, preferred_element_type=jnp.float32)        # shift +2
    taps2 = jnp.concatenate([h1m, h1, h1p], axis=0)                   # (3*HID, 16)
    c2 = jnp.dot(wc2, taps2, preferred_element_type=jnp.float32) + bc2
    h2 = jnp.maximum(c2, 0.0) + h1                                    # (HID, 16)

    # -------- head: per-batch time-mean of cat([ic, h2]) -> Linear -> LogSoftmax --------
    mmat = sl[_R_M:_R_M + BT2, 0:B]                                   # (16, 2)
    wa = sl[_R_WA:_R_WA + NCLASS, 0:F2]
    wb = sl[_R_WB:_R_WB + NCLASS, 0:HID]
    bo = sl[_R_BO:_R_BO + NCLASS, 0:1]
    feat_a = jnp.dot(ic, mmat, preferred_element_type=jnp.float32)    # (F2, B)
    feat_b = jnp.dot(h2, mmat, preferred_element_type=jnp.float32)    # (HID, B)
    logits = (jnp.dot(wa, feat_a, preferred_element_type=jnp.float32)
              + jnp.dot(wb, feat_b, preferred_element_type=jnp.float32) + bo)  # (NCLASS, B)
    m = jnp.max(logits, axis=0, keepdims=True)
    lse = jnp.log(jnp.sum(jnp.exp(logits - m), axis=0, keepdims=True)) + m
    o_ref[...] = logits - lse


# ======================= pallas_call wrapper ==========================
def _forward_impl(x, fp):
    # channel-major layout: (CIN, B*T); lanes = b*T + t
    x_cm = jnp.transpose(x, (1, 0, 2)).reshape(CIN, BT)
    out_cm = pl.pallas_call(
        eeg_cdilnet_kernel,
        out_shape=jax.ShapeDtypeStruct((NCLASS, B), jnp.float32),
        grid=(1,),
        in_specs=[
            pl.BlockSpec((CIN, BT), lambda i: (0, 0)),            # x (channel-major)
            pl.BlockSpec((SLAB_ROWS, SLAB_COLS), lambda i: (0, 0)),  # packed small params
            pl.BlockSpec((F2, KD * F2), lambda i: (0, 0)),        # stage-2 composite weight
            pl.BlockSpec((BT, T), lambda i: (0, 0)),              # pool-1 matrix (bf16)
            pl.BlockSpec((BT1, BT2), lambda i: (0, 0)),           # pool-2 matrix
        ],
        out_specs=pl.BlockSpec((NCLASS, B), lambda i: (0, 0)),
    )(x_cm, fp["slab"], fp["aflat"], fp["p1bd"], fp["p2"])
    return out_cm.T                                               # (B, NCLASS) log-probs


eeg_cdilnet_forward = jax.jit(_forward_impl)


# ================= parameter construction & host-side folding =================
def _bn_fold(gamma, beta, rmean, rvar):
    s = gamma / jnp.sqrt(rvar + EPS)
    return s, beta - rmean * s


def _pool_matrix(n_in, factor):
    return jnp.repeat(jnp.eye(n_in // factor, dtype=jnp.float32), factor, axis=0) / factor


def _block_diag2(m):
    r, c = m.shape
    z = jnp.zeros((r, c), jnp.float32)
    top = jnp.concatenate([m, z], axis=1)
    bot = jnp.concatenate([z, m], axis=1)
    return jnp.concatenate([top, bot], axis=0)


def _circ_perm8(s):
    # (x @ P_s)[:, t] = x[:, (t + s) mod T2]
    t = jnp.arange(T2)
    j = jnp.arange(T2)[:, None]
    return (j == ((t + s) % T2)[None, :]).astype(jnp.float32)


def make_raw_params(key):
    ks = jax.random.split(key, 24)
    n = lambda i, shape, s=0.1: s * jax.random.normal(ks[i], shape, jnp.float32)
    r = {}
    r["w1"] = n(0, (F1, KE))
    r["g1"], r["be1"] = 1.0 + n(1, (F1,)), n(2, (F1,))
    r["m1"], r["v1"] = n(3, (F1,)), 1.0 + jnp.abs(n(4, (F1,)))
    r["w2"] = n(5, (F2, CIN))
    r["g2"], r["be2"] = 1.0 + n(6, (F2,)), n(7, (F2,))
    r["m2"], r["v2"] = n(8, (F2,)), 1.0 + jnp.abs(n(9, (F2,)))
    r["wd"] = n(10, (F2, KD))
    r["wp"] = n(11, (F2, F2))
    r["g3"], r["be3"] = 1.0 + n(12, (F2,)), n(13, (F2,))
    r["m3"], r["v3"] = n(14, (F2,)), 1.0 + jnp.abs(n(15, (F2,)))
    r["wc1"] = n(16, (HID, F2, KS))
    r["wc2"] = n(17, (HID, HID, KS))
    r["bc1"] = n(18, (HID,))
    r["wr1"] = n(19, (HID, F2))
    r["br1"] = n(20, (HID,))
    r["bc2"] = n(21, (HID,))
    r["w_out"] = n(22, (NCLASS, F2 + HID))
    r["b_out"] = n(23, (NCLASS,))
    return r


def fold_params(r):
    s1, b1s = _bn_fold(r["g1"], r["be1"], r["m1"], r["v1"])
    s2, b2s = _bn_fold(r["g2"], r["be2"], r["m2"], r["v2"])
    s3, b3s = _bn_fold(r["g3"], r["be3"], r["m3"], r["v3"])

    grp = jnp.arange(F2) // D
    seff = s2 * s1[grp]
    w1eff = seff[:, None] * r["w1"][grp]                              # (F2, KE)
    beff1 = s2 * b1s[grp] * jnp.sum(r["w2"], axis=1) + b2s            # (F2,)

    # stage-2 composite weight: Aflat[g, k*F2 + f] = s3[g]*wp[g,f]*wd[f,k]
    a = s3[:, None, None] * r["wp"][:, :, None] * r["wd"][None, :, :]
    aflat = jnp.transpose(a, (0, 2, 1)).reshape(F2, KD * F2)

    # pooling matrices (per-batch block-diagonal); pool-1 right-padded to 128 lanes
    p1bd = _block_diag2(_pool_matrix(T, POOL))                        # (256, 64)
    p1bd = jnp.concatenate([p1bd, jnp.zeros((BT, T - BT1), jnp.float32)], axis=1)
    p2 = _block_diag2(_pool_matrix(T1, POOL))                         # (64, 16)

    wc1all = jnp.concatenate([r["wc1"][:, :, k] for k in range(KS)], axis=1)  # (8, 48)
    wc2all = jnp.concatenate([r["wc2"][:, :, k] for k in range(KS)], axis=1)  # (8, 24)
    mmat = jnp.repeat(jnp.eye(B, dtype=jnp.float32), T2, axis=0) / T2          # (16, 2)

    def place(slab, r0, arr):
        arr = jnp.asarray(arr, jnp.float32)
        return slab.at[r0:r0 + arr.shape[0], 0:arr.shape[1]].set(arr)

    slab = jnp.zeros((SLAB_ROWS, SLAB_COLS), jnp.float32)
    slab = place(slab, _R_W2, r["w2"])
    slab = place(slab, _R_W1E, w1eff)
    slab = place(slab, _R_BE1, beff1.reshape(F2, 1))
    slab = place(slab, _R_BE2, b3s.reshape(F2, 1))
    slab = place(slab, _R_PM1, _block_diag2(_circ_perm8(-1)))
    slab = place(slab, _R_PP1, _block_diag2(_circ_perm8(+1)))
    slab = place(slab, _R_PM2, _block_diag2(_circ_perm8(-2)))
    slab = place(slab, _R_PP2, _block_diag2(_circ_perm8(+2)))
    slab = place(slab, _R_WC1, wc1all)
    slab = place(slab, _R_WC2, wc2all)
    slab = place(slab, _R_WR1, r["wr1"])
    slab = place(slab, _R_BC1, r["bc1"].reshape(HID, 1))
    slab = place(slab, _R_BR1, r["br1"].reshape(HID, 1))
    slab = place(slab, _R_BC2, r["bc2"].reshape(HID, 1))
    slab = place(slab, _R_M, mmat)
    slab = place(slab, _R_WA, r["w_out"][:, :F2])
    slab = place(slab, _R_WB, r["w_out"][:, F2:])
    slab = place(slab, _R_BO, r["b_out"].reshape(NCLASS, 1))

    return {
        "slab": slab,
        "aflat": aflat,
        "p1bd": p1bd.astype(jnp.bfloat16),   # exact (0 / 0.25) values
        "p2": p2,
    }


# ================== pure-JAX reference (unfolded math) for checking ==================
def reference_forward(x, r):
    s1, b1s = _bn_fold(r["g1"], r["be1"], r["m1"], r["v1"])
    s2, b2s = _bn_fold(r["g2"], r["be2"], r["m2"], r["v2"])
    s3, b3s = _bn_fold(r["g3"], r["be3"], r["m3"], r["v3"])
    xpad = jnp.pad(x, ((0, 0), (0, 0), (KE // 2 - 1, KE // 2)))
    cols = jnp.stack([xpad[:, :, k:k + T] for k in range(KE)], axis=-1)   # (B,CIN,T,KE)
    y = jnp.einsum("bctk,fk->bfct", cols, r["w1"])
    y = y * s1[None, :, None, None] + b1s[None, :, None, None]
    yg = y[:, jnp.arange(F2) // D]                                         # (B,F2,CIN,T)
    z = jnp.einsum("bfct,fc->bft", yg, r["w2"])
    z = _elu(z * s2[None, :, None] + b2s[None, :, None])
    y1 = z.reshape(B, F2, T1, POOL).mean(-1)
    y1p = jnp.pad(y1, ((0, 0), (0, 0), (KD // 2 - 1, KD // 2)))
    cols2 = jnp.stack([y1p[:, :, k:k + T1] for k in range(KD)], axis=-1)   # (B,F2,T1,KD)
    v = jnp.einsum("bftk,fk->bft", cols2, r["wd"])
    w = jnp.einsum("bft,gf->bgt", v, r["wp"])
    w = _elu(w * s3[None, :, None] + b3s[None, :, None])
    in_cdil = w.reshape(B, F2, T2, POOL).mean(-1)

    def circ(inp, wc, d):
        out = 0.0
        for k in range(KS):
            sh = jnp.roll(inp, -(k - 1) * d, axis=-1)
            out = out + jnp.einsum("hc,bct->bht", wc[:, :, k], sh)
        return out

    c1 = circ(in_cdil, r["wc1"], 1) + r["bc1"][None, :, None]
    r1 = jnp.einsum("hc,bct->bht", r["wr1"], in_cdil) + r["br1"][None, :, None]
    h1 = jnp.maximum(c1, 0.0) + r1
    c2 = circ(h1, r["wc2"], 2) + r["bc2"][None, :, None]
    h2 = jnp.maximum(c2, 0.0) + h1
    feat = jnp.concatenate([in_cdil, h2], axis=1).mean(-1)                 # (B, F2+HID)
    logits = feat @ r["w_out"].T + r["b_out"][None, :]
    return jax.nn.log_softmax(logits, axis=1)


if __name__ == "__main__":
    key = jax.random.PRNGKey(0)
    kx, kp = jax.random.split(key)
    x = jax.random.normal(kx, (B, CIN, T), jnp.float32)
    raw = make_raw_params(kp)
    folded = fold_params(raw)

    logp = jax.block_until_ready(eeg_cdilnet_forward(x, folded))
    assert logp.shape == (B, NCLASS)
    assert bool(jnp.all(jnp.isfinite(logp)))

    ref = jax.block_until_ready(reference_forward(x, raw))
    np.testing.assert_allclose(np.asarray(logp), np.asarray(ref), rtol=2e-2, atol=2e-2)
    print("KERNEL_OK")
</pallas_src>

<mosaic_0001>
module attributes {stable_mosaic.version = 11 : i64} {
  func.func @eeg_cdilnet_kernel(%arg0: i32, %arg1: memref<4x256xf32, #tpu.memory_space<vmem>>, %arg2: memref<216x48xf32, #tpu.memory_space<vmem>>, %arg3: memref<16x256xf32, #tpu.memory_space<vmem>>, %arg4: memref<256x128xbf16, #tpu.memory_space<vmem>>, %arg5: memref<64x16xf32, #tpu.memory_space<vmem>>, %arg6: memref<4x2xf32, #tpu.memory_space<vmem>>) attributes {dimension_semantics = [#tpu.dimension_semantics<arbitrary>], iteration_bounds = array<i64: 1>, scalar_prefetch = 0 : i64, scratch_operands = 0 : i64, tpu.core_type = #tpu.core_type<tc>, window_params = [{pipeline_mode = #tpu.pipeline_mode<synchronous>, transform_indices = @transform_0, window_bounds = array<i64: 4, 256>}, {pipeline_mode = #tpu.pipeline_mode<synchronous>, transform_indices = @transform_1, window_bounds = array<i64: 216, 48>}, {pipeline_mode = #tpu.pipeline_mode<synchronous>, transform_indices = @transform_2, window_bounds = array<i64: 16, 256>}, {pipeline_mode = #tpu.pipeline_mode<synchronous>, transform_indices = @transform_3, window_bounds = array<i64: 256, 128>}, {pipeline_mode = #tpu.pipeline_mode<synchronous>, transform_indices = @transform_4, window_bounds = array<i64: 64, 16>}, {pipeline_mode = #tpu.pipeline_mode<synchronous>, transform_indices = @transform_5, window_bounds = array<i64: 4, 2>}]} {
    %c0 = arith.constant 0 : index
    %c0_0 = arith.constant 0 : index
    %0 = vector.load %arg2[%c0, %c0_0] : memref<216x48xf32, #tpu.memory_space<vmem>>, vector<216x48xf32>
    %c0_1 = arith.constant 0 : index
    %c0_2 = arith.constant 0 : index
    %1 = vector.load %arg1[%c0_1, %c0_2] : memref<4x256xf32, #tpu.memory_space<vmem>>, vector<4x256xf32>
    %2 = vector.extract_strided_slice %0 {offsets = [0, 0], sizes = [16, 4], strides = [1, 1]} : vector<216x48xf32> to vector<16x4xf32>
    %3 = vector.extract_strided_slice %0 {offsets = [16, 0], sizes = [16, 16], strides = [1, 1]} : vector<216x48xf32> to vector<16x16xf32>
    %4 = vector.extract_strided_slice %0 {offsets = [32, 0], sizes = [16, 1], strides = [1, 1]} : vector<216x48xf32> to vector<16x1xf32>
    %5 = vector.extract_strided_slice %0 {offsets = [48, 0], sizes = [16, 1], strides = [1, 1]} : vector<216x48xf32> to vector<16x1xf32>
    %cst = arith.constant dense<0.000000e+00> : vector<16x256xf32>
    %6 = tpu.matmul %2, %1, %cst {dimension_numbers = #tpu.dot_dimension_numbers<[1], [0], [0], [1], [0, 0, 1, 1], [], []>} : vector<16x4xf32>, vector<4x256xf32>, vector<16x256xf32> -> vector<16x256xf32>
    %7 = tpu.iota {dimensions = array<i32: 1>} : vector<16x256xi32>
    %c127_i32 = arith.constant 127 : i32
    %8 = vector.broadcast %c127_i32 : i32 to vector<16x256xi32>
    %9 = arith.andi %7, %8 : vector<16x256xi32>
    %cst_3 = arith.constant 0.000000e+00 : f32
    %10 = vector.broadcast %cst_3 : f32 to vector<16x256xf32>
    %c7_i32 = arith.constant 7 : i32
    %11 = tpu.dynamic_rotate %6 by %c7_i32 dim 1 : vector<16x256xf32>, i32 -> vector<16x256xf32>
    %c7_i32_4 = arith.constant 7 : i32
    %12 = vector.broadcast %c7_i32_4 : i32 to vector<16x256xi32>
    %13 = arith.cmpi sge, %9, %12 : vector<16x256xi32>
    %c134_i32 = arith.constant 134 : i32
    %14 = vector.broadcast %c134_i32 : i32 to vector<16x256xi32>
    %15 = arith.cmpi sle, %9, %14 : vector<16x256xi32>
    %16 = arith.andi %13, %15 : vector<16x256xi1>
    %17 = vector.extract_strided_slice %3 {offsets = [0, 0], sizes = [16, 1], strides = [1, 1]} : vector<16x16xf32> to vector<16x1xf32>
    %cst_5 = arith.constant 0.000000e+00 : f32
    %18 = vector.broadcast %cst_5 : f32 to vector<16x256xf32>
    %19 = arith.select %16, %11, %18 : vector<16x256xi1>, vector<16x256xf32>
    %20 = vector.broadcast %17 : vector<16x1xf32> to vector<16x256xf32>
    %21 = arith.mulf %20, %19 : vector<16x256xf32>
    %22 = arith.addf %10, %21 : vector<16x256xf32>
    %c6_i32 = arith.constant 6 : i32
    %23 = tpu.dynamic_rotate %6 by %c6_i32 dim 1 : vector<16x256xf32>, i32 -> vector<16x256xf32>
    %c6_i32_6 = arith.constant 6 : i32
    %24 = vector.broadcast %c6_i32_6 : i32 to vector<16x256xi32>
    %25 = arith.cmpi sge, %9, %24 : vector<16x256xi32>
    %c133_i32 = arith.constant 133 : i32
    %26 = vector.broadcast %c133_i32 : i32 to vector<16x256xi32>
    %27 = arith.cmpi sle, %9, %26 : vector<16x256xi32>
    %28 = arith.andi %25, %27 : vector<16x256xi1>
    %29 = vector.extract_strided_slice %3 {offsets = [0, 1], sizes = [16, 1], strides = [1, 1]} : vector<16x16xf32> to vector<16x1xf32>
    %cst_7 = arith.constant 0.000000e+00 : f32
    %30 = vector.broadcast %cst_7 : f32 to vector<16x256xf32>
    %31 = arith.select %28, %23, %30 : vector<16x256xi1>, vector<16x256xf32>
    %32 = vector.broadcast %29 : vector<16x1xf32> to vector<16x256xf32>
    %33 = arith.mulf %32, %31 : vector<16x256xf32>
    %34 = arith.addf %22, %33 : vector<16x256xf32>
    %c5_i32 = arith.constant 5 : i32
    %35 = tpu.dynamic_rotate %6 by %c5_i32 dim 1 : vector<16x256xf32>, i32 -> vector<16x256xf32>
    %c5_i32_8 = arith.constant 5 : i32
    %36 = vector.broadcast %c5_i32_8 : i32 to vector<16x256xi32>
    %37 = arith.cmpi sge, %9, %36 : vector<16x256xi32>
    %c132_i32 = arith.constant 132 : i32
    %38 = vector.broadcast %c132_i32 : i32 to vector<16x256xi32>
    %39 = arith.cmpi sle, %9, %38 : vector<16x256xi32>
    %40 = arith.andi %37, %39 : vector<16x256xi1>
    %41 = vector.extract_strided_slice %3 {offsets = [0, 2], sizes = [16, 1], strides = [1, 1]} : vector<16x16xf32> to vector<16x1xf32>
    %cst_9 = arith.constant 0.000000e+00 : f32
    %42 = vector.broadcast %cst_9 : f32 to vector<16x256xf32>
    %43 = arith.select %40, %35, %42 : vector<16x256xi1>, vector<16x256xf32>
    %44 = vector.broadcast %41 : vector<16x1xf32> to vector<16x256xf32>
    %45 = arith.mulf %44, %43 : vector<16x256xf32>
    %46 = arith.addf %34, %45 : vector<16x256xf32>
    %c4_i32 = arith.constant 4 : i32
    %47 = tpu.dynamic_rotate %6 by %c4_i32 dim 1 : vector<16x256xf32>, i32 -> vector<16x256xf32>
    %c4_i32_10 = arith.constant 4 : i32
    %48 = vector.broadcast %c4_i32_10 : i32 to vector<16x256xi32>
    %49 = arith.cmpi sge, %9, %48 : vector<16x256xi32>
    %c131_i32 = arith.constant 131 : i32
    %50 = vector.broadcast %c131_i32 : i32 to vector<16x256xi32>
    %51 = arith.cmpi sle, %9, %50 : vector<16x256xi32>
    %52 = arith.andi %49, %51 : vector<16x256xi1>
    %53 = vector.extract_strided_slice %3 {offsets = [0, 3], sizes = [16, 1], strides = [1, 1]} : vector<16x16xf32> to vector<16x1xf32>
    %cst_11 = arith.constant 0.000000e+00 : f32
    %54 = vector.broadcast %cst_11 : f32 to vector<16x256xf32>
    %55 = arith.select %52, %47, %54 : vector<16x256xi1>, vector<16x256xf32>
    %56 = vector.broadcast %53 : vector<16x1xf32> to vector<16x256xf32>
    %57 = arith.mulf %56, %55 : vector<16x256xf32>
    %58 = arith.addf %46, %57 : vector<16x256xf32>
    %c3_i32 = arith.constant 3 : i32
    %59 = tpu.dynamic_rotate %6 by %c3_i32 dim 1 : vector<16x256xf32>, i32 -> vector<16x256xf32>
    %c3_i32_12 = arith.constant 3 : i32
    %60 = vector.broadcast %c3_i32_12 : i32 to vector<16x256xi32>
    %61 = arith.cmpi sge, %9, %60 : vector<16x256xi32>
    %c130_i32 = arith.constant 130 : i32
    %62 = vector.broadcast %c130_i32 : i32 to vector<16x256xi32>
    %63 = arith.cmpi sle, %9, %62 : vector<16x256xi32>
    %64 = arith.andi %61, %63 : vector<16x256xi1>
    %65 = vector.extract_strided_slice %3 {offsets = [0, 4], sizes = [16, 1], strides = [1, 1]} : vector<16x16xf32> to vector<16x1xf32>
    %cst_13 = arith.constant 0.000000e+00 : f32
    %66 = vector.broadcast %cst_13 : f32 to vector<16x256xf32>
    %67 = arith.select %64, %59, %66 : vector<16x256xi1>, vector<16x256xf32>
    %68 = vector.broadcast %65 : vector<16x1xf32> to vector<16x256xf32>
    %69 = arith.mulf %68, %67 : vector<16x256xf32>
    %70 = arith.addf %58, %69 : vector<16x256xf32>
    %c2_i32 = arith.constant 2 : i32
    %71 = tpu.dynamic_rotate %6 by %c2_i32 dim 1 : vector<16x256xf32>, i32 -> vector<16x256xf32>
    %c2_i32_14 = arith.constant 2 : i32
    %72 = vector.broadcast %c2_i32_14 : i32 to vector<16x256xi32>
    %73 = arith.cmpi sge, %9, %72 : vector<16x256xi32>
    %c129_i32 = arith.constant 129 : i32
    %74 = vector.broadcast %c129_i32 : i32 to vector<16x256xi32>
    %75 = arith.cmpi sle, %9, %74 : vector<16x256xi32>
    %76 = arith.andi %73, %75 : vector<16x256xi1>
    %77 = vector.extract_strided_slice %3 {offsets = [0, 5], sizes = [16, 1], strides = [1, 1]} : vector<16x16xf32> to vector<16x1xf32>
    %cst_15 = arith.constant 0.000000e+00 : f32
    %78 = vector.broadcast %cst_15 : f32 to vector<16x256xf32>
    %79 = arith.select %76, %71, %78 : vector<16x256xi1>, vector<16x256xf32>
    %80 = vector.broadcast %77 : vector<16x1xf32> to vector<16x256xf32>
    %81 = arith.mulf %80, %79 : vector<16x256xf32>
    %82 = arith.addf %70, %81 : vector<16x256xf32>
    %c1_i32 = arith.constant 1 : i32
    %83 = tpu.dynamic_rotate %6 by %c1_i32 dim 1 : vector<16x256xf32>, i32 -> vector<16x256xf32>
    %c1_i32_16 = arith.constant 1 : i32
    %84 = vector.broadcast %c1_i32_16 : i32 to vector<16x256xi32>
    %85 = arith.cmpi sge, %9, %84 : vector<16x256xi32>
    %c128_i32 = arith.constant 128 : i32
    %86 = vector.broadcast %c128_i32 : i32 to vector<16x256xi32>
    %87 = arith.cmpi sle, %9, %86 : vector<16x256xi32>
    %88 = arith.andi %85, %87 : vector<16x256xi1>
    %89 = vector.extract_strided_slice %3 {offsets = [0, 6], sizes = [16, 1], strides = [1, 1]} : vector<16x16xf32> to vector<16x1xf32>
    %cst_17 = arith.constant 0.000000e+00 : f32
    %90 = vector.broadcast %cst_17 : f32 to vector<16x256xf32>
    %91 = arith.select %88, %83, %90 : vector<16x256xi1>, vector<16x256xf32>
    %92 = vector.broadcast %89 : vector<16x1xf32> to vector<16x256xf32>
    %93 = arith.mulf %92, %91 : vector<16x256xf32>
    %94 = arith.addf %82, %93 : vector<16x256xf32>
    %c0_i32 = arith.constant 0 : i32
    %95 = tpu.dynamic_rotate %6 by %c0_i32 dim 1 : vector<16x256xf32>, i32 -> vector<16x256xf32>
    %c0_i32_18 = arith.constant 0 : i32
    %96 = vector.broadcast %c0_i32_18 : i32 to vector<16x256xi32>
    %97 = arith.cmpi sge, %9, %96 : vector<16x256xi32>
    %c127_i32_19 = arith.constant 127 : i32
    %98 = vector.broadcast %c127_i32_19 : i32 to vector<16x256xi32>
    %99 = arith.cmpi sle, %9, %98 : vector<16x256xi32>
    %100 = arith.andi %97, %99 : vector<16x256xi1>
    %101 = vector.extract_strided_slice %3 {offsets = [0, 7], sizes = [16, 1], strides = [1, 1]} : vector<16x16xf32> to vector<16x1xf32>
    %cst_20 = arith.constant 0.000000e+00 : f32
    %102 = vector.broadcast %cst_20 : f32 to vector<16x256xf32>
    %103 = arith.select %100, %95, %102 : vector<16x256xi1>, vector<16x256xf32>
    %104 = vector.broadcast %101 : vector<16x1xf32> to vector<16x256xf32>
    %105 = arith.mulf %104, %103 : vector<16x256xf32>
    %106 = arith.addf %94, %105 : vector<16x256xf32>
    %c255_i32 = arith.constant 255 : i32
    %107 = tpu.dynamic_rotate %6 by %c255_i32 dim 1 : vector<16x256xf32>, i32 -> vector<16x256xf32>
    %c-1_i32 = arith.constant -1 : i32
    %108 = vector.broadcast %c-1_i32 : i32 to vector<16x256xi32>
    %109 = arith.cmpi sge, %9, %108 : vector<16x256xi32>
    %c126_i32 = arith.constant 126 : i32
    %110 = vector.broadcast %c126_i32 : i32 to vector<16x256xi32>
    %111 = arith.cmpi sle, %9, %110 : vector<16x256xi32>
    %112 = arith.andi %109, %111 : vector<16x256xi1>
    %113 = vector.extract_strided_slice %3 {offsets = [0, 8], sizes = [16, 1], strides = [1, 1]} : vector<16x16xf32> to vector<16x1xf32>
    %cst_21 = arith.constant 0.000000e+00 : f32
    %114 = vector.broadcast %cst_21 : f32 to vector<16x256xf32>
    %115 = arith.select %112, %107, %114 : vector<16x256xi1>, vector<16x256xf32>
    %116 = vector.broadcast %113 : vector<16x1xf32> to vector<16x256xf32>
    %117 = arith.mulf %116, %115 : vector<16x256xf32>
    %118 = arith.addf %106, %117 : vector<16x256xf32>
    %c254_i32 = arith.constant 254 : i32
    %119 = tpu.dynamic_rotate %6 by %c254_i32 dim 1 : vector<16x256xf32>, i32 -> vector<16x256xf32>
    %c-2_i32 = arith.constant -2 : i32
    %120 = vector.broadcast %c-2_i32 : i32 to vector<16x256xi32>
    %121 = arith.cmpi sge, %9, %120 : vector<16x256xi32>
    %c125_i32 = arith.constant 125 : i32
    %122 = vector.broadcast %c125_i32 : i32 to vector<16x256xi32>
    %123 = arith.cmpi sle, %9, %122 : vector<16x256xi32>
    %124 = arith.andi %121, %123 : vector<16x256xi1>
    %125 = vector.extract_strided_slice %3 {offsets = [0, 9], sizes = [16, 1], strides = [1, 1]} : vector<16x16xf32> to vector<16x1xf32>
    %cst_22 = arith.constant 0.000000e+00 : f32
    %126 = vector.broadcast %cst_22 : f32 to vector<16x256xf32>
    %127 = arith.select %124, %119, %126 : vector<16x256xi1>, vector<16x256xf32>
    %128 = vector.broadcast %125 : vector<16x1xf32> to vector<16x256xf32>
    %129 = arith.mulf %128, %127 : vector<16x256xf32>
    %130 = arith.addf %118, %129 : vector<16x256xf32>
    %c253_i32 = arith.constant 253 : i32
    %131 = tpu.dynamic_rotate %6 by %c253_i32 dim 1 : vector<16x256xf32>, i32 -> vector<16x256xf32>
    %c-3_i32 = arith.constant -3 : i32
    %132 = vector.broadcast %c-3_i32 : i32 to vector<16x256xi32>
    %133 = arith.cmpi sge, %9, %132 : vector<16x256xi32>
    %c124_i32 = arith.constant 124 : i32
    %134 = vector.broadcast %c124_i32 : i32 to vector<16x256xi32>
    %135 = arith.cmpi sle, %9, %134 : vector<16x256xi32>
    %136 = arith.andi %133, %135 : vector<16x256xi1>
    %137 = vector.extract_strided_slice %3 {offsets = [0, 10], sizes = [16, 1], strides = [1, 1]} : vector<16x16xf32> to vector<16x1xf32>
    %cst_23 = arith.constant 0.000000e+00 : f32
    %138 = vector.broadcast %cst_23 : f32 to vector<16x256xf32>
    %139 = arith.select %136, %131, %138 : vector<16x256xi1>, vector<16x256xf32>
    %140 = vector.broadcast %137 : vector<16x1xf32> to vector<16x256xf32>
    %141 = arith.mulf %140, %139 : vector<16x256xf32>
    %142 = arith.addf %130, %141 : vector<16x256xf32>
    %c252_i32 = arith.constant 252 : i32
    %143 = tpu.dynamic_rotate %6 by %c252_i32 dim 1 : vector<16x256xf32>, i32 -> vector<16x256xf32>
    %c-4_i32 = arith.constant -4 : i32
    %144 = vector.broadcast %c-4_i32 : i32 to vector<16x256xi32>
    %145 = arith.cmpi sge, %9, %144 : vector<16x256xi32>
    %c123_i32 = arith.constant 123 : i32
    %146 = vector.broadcast %c123_i32 : i32 to vector<16x256xi32>
    %147 = arith.cmpi sle, %9, %146 : vector<16x256xi32>
    %148 = arith.andi %145, %147 : vector<16x256xi1>
    %149 = vector.extract_strided_slice %3 {offsets = [0, 11], sizes = [16, 1], strides = [1, 1]} : vector<16x16xf32> to vector<16x1xf32>
    %cst_24 = arith.constant 0.000000e+00 : f32
    %150 = vector.broadcast %cst_24 : f32 to vector<16x256xf32>
    %151 = arith.select %148, %143, %150 : vector<16x256xi1>, vector<16x256xf32>
    %152 = vector.broadcast %149 : vector<16x1xf32> to vector<16x256xf32>
    %153 = arith.mulf %152, %151 : vector<16x256xf32>
    %154 = arith.addf %142, %153 : vector<16x256xf32>
    %c251_i32 = arith.constant 251 : i32
    %155 = tpu.dynamic_rotate %6 by %c251_i32 dim 1 : vector<16x256xf32>, i32 -> vector<16x256xf32>
    %c-5_i32 = arith.constant -5 : i32
    %156 = vector.broadcast %c-5_i32 : i32 to vector<16x256xi32>
    %157 = arith.cmpi sge, %9, %156 : vector<16x256xi32>
    %c122_i32 = arith.constant 122 : i32
    %158 = vector.broadcast %c122_i32 : i32 to vector<16x256xi32>
    %159 = arith.cmpi sle, %9, %158 : vector<16x256xi32>
    %160 = arith.andi %157, %159 : vector<16x256xi1>
    %161 = vector.extract_strided_slice %3 {offsets = [0, 12], sizes = [16, 1], strides = [1, 1]} : vector<16x16xf32> to vector<16x1xf32>
    %cst_25 = arith.constant 0.000000e+00 : f32
    %162 = vector.broadcast %cst_25 : f32 to vector<16x256xf32>
    %163 = arith.select %160, %155, %162 : vector<16x256xi1>, vector<16x256xf32>
    %164 = vector.broadcast %161 : vector<16x1xf32> to vector<16x256xf32>
    %165 = arith.mulf %164, %163 : vector<16x256xf32>
    %166 = arith.addf %154, %165 : vector<16x256xf32>
    %c250_i32 = arith.constant 250 : i32
    %167 = tpu.dynamic_rotate %6 by %c250_i32 dim 1 : vector<16x256xf32>, i32 -> vector<16x256xf32>
    %c-6_i32 = arith.constant -6 : i32
    %168 = vector.broadcast %c-6_i32 : i32 to vector<16x256xi32>
    %169 = arith.cmpi sge, %9, %168 : vector<16x256xi32>
    %c121_i32 = arith.constant 121 : i32
    %170 = vector.broadcast %c121_i32 : i32 to vector<16x256xi32>
    %171 = arith.cmpi sle, %9, %170 : vector<16x256xi32>
    %172 = arith.andi %169, %171 : vector<16x256xi1>
    %173 = vector.extract_strided_slice %3 {offsets = [0, 13], sizes = [16, 1], strides = [1, 1]} : vector<16x16xf32> to vector<16x1xf32>
    %cst_26 = arith.constant 0.000000e+00 : f32
    %174 = vector.broadcast %cst_26 : f32 to vector<16x256xf32>
    %175 = arith.select %172, %167, %174 : vector<16x256xi1>, vector<16x256xf32>
    %176 = vector.broadcast %173 : vector<16x1xf32> to vector<16x256xf32>
    %177 = arith.mulf %176, %175 : vector<16x256xf32>
    %178 = arith.addf %166, %177 : vector<16x256xf32>
    %c249_i32 = arith.constant 249 : i32
    %179 = tpu.dynamic_rotate %6 by %c249_i32 dim 1 : vector<16x256xf32>, i32 -> vector<16x256xf32>
    %c-7_i32 = arith.constant -7 : i32
    %180 = vector.broadcast %c-7_i32 : i32 to vector<16x256xi32>
    %181 = arith.cmpi sge, %9, %180 : vector<16x256xi32>
    %c120_i32 = arith.constant 120 : i32
    %182 = vector.broadcast %c120_i32 : i32 to vector<16x256xi32>
    %183 = arith.cmpi sle, %9, %182 : vector<16x256xi32>
    %184 = arith.andi %181, %183 : vector<16x256xi1>
    %185 = vector.extract_strided_slice %3 {offsets = [0, 14], sizes = [16, 1], strides = [1, 1]} : vector<16x16xf32> to vector<16x1xf32>
    %cst_27 = arith.constant 0.000000e+00 : f32
    %186 = vector.broadcast %cst_27 : f32 to vector<16x256xf32>
    %187 = arith.select %184, %179, %186 : vector<16x256xi1>, vector<16x256xf32>
    %188 = vector.broadcast %185 : vector<16x1xf32> to vector<16x256xf32>
    %189 = arith.mulf %188, %187 : vector<16x256xf32>
    %190 = arith.addf %178, %189 : vector<16x256xf32>
    %c248_i32 = arith.constant 248 : i32
    %191 = tpu.dynamic_rotate %6 by %c248_i32 dim 1 : vector<16x256xf32>, i32 -> vector<16x256xf32>
    %c-8_i32 = arith.constant -8 : i32
    %192 = vector.broadcast %c-8_i32 : i32 to vector<16x256xi32>
    %193 = arith.cmpi sge, %9, %192 : vector<16x256xi32>
    %c119_i32 = arith.constant 119 : i32
    %194 = vector.broadcast %c119_i32 : i32 to vector<16x256xi32>
    %195 = arith.cmpi sle, %9, %194 : vector<16x256xi32>
    %196 = arith.andi %193, %195 : vector<16x256xi1>
    %197 = vector.extract_strided_slice %3 {offsets = [0, 15], sizes = [16, 1], strides = [1, 1]} : vector<16x16xf32> to vector<16x1xf32>
    %cst_28 = arith.constant 0.000000e+00 : f32
    %198 = vector.broadcast %cst_28 : f32 to vector<16x256xf32>
    %199 = arith.select %196, %191, %198 : vector<16x256xi1>, vector<16x256xf32>
    %200 = vector.broadcast %197 : vector<16x1xf32> to vector<16x256xf32>
    %201 = arith.mulf %200, %199 : vector<16x256xf32>
    %202 = arith.addf %190, %201 : vector<16x256xf32>
    %203 = vector.broadcast %4 : vector<16x1xf32> to vector<16x256xf32>
    %204 = arith.addf %202, %203 : vector<16x256xf32>
    %cst_29 = arith.constant 0.000000e+00 : f32
    %205 = vector.broadcast %cst_29 : f32 to vector<16x256xf32>
    %206 = arith.cmpf ogt, %204, %205 : vector<16x256xf32>
    %cst_30 = arith.constant 0.000000e+00 : f32
    %207 = vector.broadcast %cst_30 : f32 to vector<16x256xf32>
    %208 = arith.minimumf %204, %207 : vector<16x256xf32>
    %209 = math.exp %208 : vector<16x256xf32>
    %cst_31 = arith.constant 1.000000e+00 : f32
    %210 = vector.broadcast %cst_31 : f32 to vector<16x256xf32>
    %211 = arith.subf %209, %210 : vector<16x256xf32>
    %212 = arith.select %206, %204, %211 : vector<16x256xi1>, vector<16x256xf32>
    %213 = arith.truncf %212 : vector<16x256xf32> to vector<16x256xbf16>
    %c0_32 = arith.constant 0 : index
    %c0_33 = arith.constant 0 : index
    %214 = vector.load %arg4[%c0_32, %c0_33] : memref<256x128xbf16, #tpu.memory_space<vmem>>, vector<256x128xbf16>
    %cst_34 = arith.constant dense<0.000000e+00> : vector<16x128xf32>
    %215 = tpu.matmul %213, %214, %cst_34 {dimension_numbers = #tpu.dot_dimension_numbers<[1], [0], [0], [1], [0, 0, 1, 1], [], []>} : vector<16x256xbf16>, vector<256x128xbf16>, vector<16x128xf32> -> vector<16x128xf32>
    %216 = tpu.iota {dimensions = array<i32: 1>} : vector<16x128xi32>
    %c31_i32 = arith.constant 31 : i32
    %217 = vector.broadcast %c31_i32 : i32 to vector<16x128xi32>
    %218 = arith.andi %216, %217 : vector<16x128xi32>
    %c64_i32 = arith.constant 64 : i32
    %219 = vector.broadcast %c64_i32 : i32 to vector<16x128xi32>
    %220 = arith.cmpi slt, %216, %219 : vector<16x128xi32>
    %c7_i32_35 = arith.constant 7 : i32
    %221 = tpu.dynamic_rotate %215 by %c7_i32_35 dim 1 : vector<16x128xf32>, i32 -> vector<16x128xf32>
    %c7_i32_36 = arith.constant 7 : i32
    %222 = vector.broadcast %c7_i32_36 : i32 to vector<16x128xi32>
    %223 = arith.cmpi sge, %218, %222 : vector<16x128xi32>
    %c38_i32 = arith.constant 38 : i32
    %224 = vector.broadcast %c38_i32 : i32 to vector<16x128xi32>
    %225 = arith.cmpi sle, %218, %224 : vector<16x128xi32>
    %226 = arith.andi %223, %225 : vector<16x128xi1>
    %227 = arith.andi %226, %220 : vector<16x128xi1>
    %cst_37 = arith.constant 0.000000e+00 : f32
    %228 = vector.broadcast %cst_37 : f32 to vector<16x128xf32>
    %229 = arith.select %227, %221, %228 : vector<16x128xi1>, vector<16x128xf32>
    %c6_i32_38 = arith.constant 6 : i32
    %230 = tpu.dynamic_rotate %215 by %c6_i32_38 dim 1 : vector<16x128xf32>, i32 -> vector<16x128xf32>
    %c6_i32_39 = arith.constant 6 : i32
    %231 = vector.broadcast %c6_i32_39 : i32 to vector<16x128xi32>
    %232 = arith.cmpi sge, %218, %231 : vector<16x128xi32>
    %c37_i32 = arith.constant 37 : i32
    %233 = vector.broadcast %c37_i32 : i32 to vector<16x128xi32>
    %234 = arith.cmpi sle, %218, %233 : vector<16x128xi32>
    %235 = arith.andi %232, %234 : vector<16x128xi1>
    %236 = arith.andi %235, %220 : vector<16x128xi1>
    %cst_40 = arith.constant 0.000000e+00 : f32
    %237 = vector.broadcast %cst_40 : f32 to vector<16x128xf32>
    %238 = arith.select %236, %230, %237 : vector<16x128xi1>, vector<16x128xf32>
    %c5_i32_41 = arith.constant 5 : i32
    %239 = tpu.dynamic_rotate %215 by %c5_i32_41 dim 1 : vector<16x128xf32>, i32 -> vector<16x128xf32>
    %c5_i32_42 = arith.constant 5 : i32
    %240 = vector.broadcast %c5_i32_42 : i32 to vector<16x128xi32>
    %241 = arith.cmpi sge, %218, %240 : vector<16x128xi32>
    %c36_i32 = arith.constant 36 : i32
    %242 = vector.broadcast %c36_i32 : i32 to vector<16x128xi32>
    %243 = arith.cmpi sle, %218, %242 : vector<16x128xi32>
    %244 = arith.andi %241, %243 : vector<16x128xi1>
    %245 = arith.andi %244, %220 : vector<16x128xi1>
    %cst_43 = arith.constant 0.000000e+00 : f32
    %246 = vector.broadcast %cst_43 : f32 to vector<16x128xf32>
    %247 = arith.select %245, %239, %246 : vector<16x128xi1>, vector<16x128xf32>
    %c4_i32_44 = arith.constant 4 : i32
    %248 = tpu.dynamic_rotate %215 by %c4_i32_44 dim 1 : vector<16x128xf32>, i32 -> vector<16x128xf32>
    %c4_i32_45 = arith.constant 4 : i32
    %249 = vector.broadcast %c4_i32_45 : i32 to vector<16x128xi32>
    %250 = arith.cmpi sge, %218, %249 : vector<16x128xi32>
    %c35_i32 = arith.constant 35 : i32
    %251 = vector.broadcast %c35_i32 : i32 to vector<16x128xi32>
    %252 = arith.cmpi sle, %218, %251 : vector<16x128xi32>
    %253 = arith.andi %250, %252 : vector<16x128xi1>
    %254 = arith.andi %253, %220 : vector<16x128xi1>
    %cst_46 = arith.constant 0.000000e+00 : f32
    %255 = vector.broadcast %cst_46 : f32 to vector<16x128xf32>
    %256 = arith.select %254, %248, %255 : vector<16x128xi1>, vector<16x128xf32>
    %c3_i32_47 = arith.constant 3 : i32
    %257 = tpu.dynamic_rotate %215 by %c3_i32_47 dim 1 : vector<16x128xf32>, i32 -> vector<16x128xf32>
    %c3_i32_48 = arith.constant 3 : i32
    %258 = vector.broadcast %c3_i32_48 : i32 to vector<16x128xi32>
    %259 = arith.cmpi sge, %218, %258 : vector<16x128xi32>
    %c34_i32 = arith.constant 34 : i32
    %260 = vector.broadcast %c34_i32 : i32 to vector<16x128xi32>
    %261 = arith.cmpi sle, %218, %260 : vector<16x128xi32>
    %262 = arith.andi %259, %261 : vector<16x128xi1>
    %263 = arith.andi %262, %220 : vector<16x128xi1>
    %cst_49 = arith.constant 0.000000e+00 : f32
    %264 = vector.broadcast %cst_49 : f32 to vector<16x128xf32>
    %265 = arith.select %263, %257, %264 : vector<16x128xi1>, vector<16x128xf32>
    %c2_i32_50 = arith.constant 2 : i32
    %266 = tpu.dynamic_rotate %215 by %c2_i32_50 dim 1 : vector<16x128xf32>, i32 -> vector<16x128xf32>
    %c2_i32_51 = arith.constant 2 : i32
    %267 = vector.broadcast %c2_i32_51 : i32 to vector<16x128xi32>
    %268 = arith.cmpi sge, %218, %267 : vector<16x128xi32>
    %c33_i32 = arith.constant 33 : i32
    %269 = vector.broadcast %c33_i32 : i32 to vector<16x128xi32>
    %270 = arith.cmpi sle, %218, %269 : vector<16x128xi32>
    %271 = arith.andi %268, %270 : vector<16x128xi1>
    %272 = arith.andi %271, %220 : vector<16x128xi1>
    %cst_52 = arith.constant 0.000000e+00 : f32
    %273 = vector.broadcast %cst_52 : f32 to vector<16x128xf32>
    %274 = arith.select %272, %266, %273 : vector<16x128xi1>, vector<16x128xf32>
    %c1_i32_53 = arith.constant 1 : i32
    %275 = tpu.dynamic_rotate %215 by %c1_i32_53 dim 1 : vector<16x128xf32>, i32 -> vector<16x128xf32>
    %c1_i32_54 = arith.constant 1 : i32
    %276 = vector.broadcast %c1_i32_54 : i32 to vector<16x128xi32>
    %277 = arith.cmpi sge, %218, %276 : vector<16x128xi32>
    %c32_i32 = arith.constant 32 : i32
    %278 = vector.broadcast %c32_i32 : i32 to vector<16x128xi32>
    %279 = arith.cmpi sle, %218, %278 : vector<16x128xi32>
    %280 = arith.andi %277, %279 : vector<16x128xi1>
    %281 = arith.andi %280, %220 : vector<16x128xi1>
    %cst_55 = arith.constant 0.000000e+00 : f32
    %282 = vector.broadcast %cst_55 : f32 to vector<16x128xf32>
    %283 = arith.select %281, %275, %282 : vector<16x128xi1>, vector<16x128xf32>
    %c0_i32_56 = arith.constant 0 : i32
    %284 = tpu.dynamic_rotate %215 by %c0_i32_56 dim 1 : vector<16x128xf32>, i32 -> vector<16x128xf32>
    %c0_i32_57 = arith.constant 0 : i32
    %285 = vector.broadcast %c0_i32_57 : i32 to vector<16x128xi32>
    %286 = arith.cmpi sge, %218, %285 : vector<16x128xi32>
    %c31_i32_58 = arith.constant 31 : i32
    %287 = vector.broadcast %c31_i32_58 : i32 to vector<16x128xi32>
    %288 = arith.cmpi sle, %218, %287 : vector<16x128xi32>
    %289 = arith.andi %286, %288 : vector<16x128xi1>
    %290 = arith.andi %289, %220 : vector<16x128xi1>
    %cst_59 = arith.constant 0.000000e+00 : f32
    %291 = vector.broadcast %cst_59 : f32 to vector<16x128xf32>
    %292 = arith.select %290, %284, %291 : vector<16x128xi1>, vector<16x128xf32>
    %c127_i32_60 = arith.constant 127 : i32
    %293 = tpu.dynamic_rotate %215 by %c127_i32_60 dim 1 : vector<16x128xf32>, i32 -> vector<16x128xf32>
    %c-1_i32_61 = arith.constant -1 : i32
    %294 = vector.broadcast %c-1_i32_61 : i32 to vector<16x128xi32>
    %295 = arith.cmpi sge, %218, %294 : vector<16x128xi32>
    %c30_i32 = arith.constant 30 : i32
    %296 = vector.broadcast %c30_i32 : i32 to vector<16x128xi32>
    %297 = arith.cmpi sle, %218, %296 : vector<16x128xi32>
    %298 = arith.andi %295, %297 : vector<16x128xi1>
    %299 = arith.andi %298, %220 : vector<16x128xi1>
    %cst_62 = arith.constant 0.000000e+00 : f32
    %300 = vector.broadcast %cst_62 : f32 to vector<16x128xf32>
    %301 = arith.select %299, %293, %300 : vector<16x128xi1>, vector<16x128xf32>
    %c126_i32_63 = arith.constant 126 : i32
    %302 = tpu.dynamic_rotate %215 by %c126_i32_63 dim 1 : vector<16x128xf32>, i32 -> vector<16x128xf32>
    %c-2_i32_64 = arith.constant -2 : i32
    %303 = vector.broadcast %c-2_i32_64 : i32 to vector<16x128xi32>
    %304 = arith.cmpi sge, %218, %303 : vector<16x128xi32>
    %c29_i32 = arith.constant 29 : i32
    %305 = vector.broadcast %c29_i32 : i32 to vector<16x128xi32>
    %306 = arith.cmpi sle, %218, %305 : vector<16x128xi32>
    %307 = arith.andi %304, %306 : vector<16x128xi1>
    %308 = arith.andi %307, %220 : vector<16x128xi1>
    %cst_65 = arith.constant 0.000000e+00 : f32
    %309 = vector.broadcast %cst_65 : f32 to vector<16x128xf32>
    %310 = arith.select %308, %302, %309 : vector<16x128xi1>, vector<16x128xf32>
    %c125_i32_66 = arith.constant 125 : i32
    %311 = tpu.dynamic_rotate %215 by %c125_i32_66 dim 1 : vector<16x128xf32>, i32 -> vector<16x128xf32>
    %c-3_i32_67 = arith.constant -3 : i32
    %312 = vector.broadcast %c-3_i32_67 : i32 to vector<16x128xi32>
    %313 = arith.cmpi sge, %218, %312 : vector<16x128xi32>
    %c28_i32 = arith.constant 28 : i32
    %314 = vector.broadcast %c28_i32 : i32 to vector<16x128xi32>
    %315 = arith.cmpi sle, %218, %314 : vector<16x128xi32>
    %316 = arith.andi %313, %315 : vector<16x128xi1>
    %317 = arith.andi %316, %220 : vector<16x128xi1>
    %cst_68 = arith.constant 0.000000e+00 : f32
    %318 = vector.broadcast %cst_68 : f32 to vector<16x128xf32>
    %319 = arith.select %317, %311, %318 : vector<16x128xi1>, vector<16x128xf32>
    %c124_i32_69 = arith.constant 124 : i32
    %320 = tpu.dynamic_rotate %215 by %c124_i32_69 dim 1 : vector<16x128xf32>, i32 -> vector<16x128xf32>
    %c-4_i32_70 = arith.constant -4 : i32
    %321 = vector.broadcast %c-4_i32_70 : i32 to vector<16x128xi32>
    %322 = arith.cmpi sge, %218, %321 : vector<16x128xi32>
    %c27_i32 = arith.constant 27 : i32
    %323 = vector.broadcast %c27_i32 : i32 to vector<16x128xi32>
    %324 = arith.cmpi sle, %218, %323 : vector<16x128xi32>
    %325 = arith.andi %322, %324 : vector<16x128xi1>
    %326 = arith.andi %325, %220 : vector<16x128xi1>
    %cst_71 = arith.constant 0.000000e+00 : f32
    %327 = vector.broadcast %cst_71 : f32 to vector<16x128xf32>
    %328 = arith.select %326, %320, %327 : vector<16x128xi1>, vector<16x128xf32>
    %c123_i32_72 = arith.constant 123 : i32
    %329 = tpu.dynamic_rotate %215 by %c123_i32_72 dim 1 : vector<16x128xf32>, i32 -> vector<16x128xf32>
    %c-5_i32_73 = arith.constant -5 : i32
    %330 = vector.broadcast %c-5_i32_73 : i32 to vector<16x128xi32>
    %331 = arith.cmpi sge, %218, %330 : vector<16x128xi32>
    %c26_i32 = arith.constant 26 : i32
    %332 = vector.broadcast %c26_i32 : i32 to vector<16x128xi32>
    %333 = arith.cmpi sle, %218, %332 : vector<16x128xi32>
    %334 = arith.andi %331, %333 : vector<16x128xi1>
    %335 = arith.andi %334, %220 : vector<16x128xi1>
    %cst_74 = arith.constant 0.000000e+00 : f32
    %336 = vector.broadcast %cst_74 : f32 to vector<16x128xf32>
    %337 = arith.select %335, %329, %336 : vector<16x128xi1>, vector<16x128xf32>
    %c122_i32_75 = arith.constant 122 : i32
    %338 = tpu.dynamic_rotate %215 by %c122_i32_75 dim 1 : vector<16x128xf32>, i32 -> vector<16x128xf32>
    %c-6_i32_76 = arith.constant -6 : i32
    %339 = vector.broadcast %c-6_i32_76 : i32 to vector<16x128xi32>
    %340 = arith.cmpi sge, %218, %339 : vector<16x128xi32>
    %c25_i32 = arith.constant 25 : i32
    %341 = vector.broadcast %c25_i32 : i32 to vector<16x128xi32>
    %342 = arith.cmpi sle, %218, %341 : vector<16x128xi32>
    %343 = arith.andi %340, %342 : vector<16x128xi1>
    %344 = arith.andi %343, %220 : vector<16x128xi1>
    %cst_77 = arith.constant 0.000000e+00 : f32
    %345 = vector.broadcast %cst_77 : f32 to vector<16x128xf32>
    %346 = arith.select %344, %338, %345 : vector<16x128xi1>, vector<16x128xf32>
    %c121_i32_78 = arith.constant 121 : i32
    %347 = tpu.dynamic_rotate %215 by %c121_i32_78 dim 1 : vector<16x128xf32>, i32 -> vector<16x128xf32>
    %c-7_i32_79 = arith.constant -7 : i32
    %348 = vector.broadcast %c-7_i32_79 : i32 to vector<16x128xi32>
    %349 = arith.cmpi sge, %218, %348 : vector<16x128xi32>
    %c24_i32 = arith.constant 24 : i32
    %350 = vector.broadcast %c24_i32 : i32 to vector<16x128xi32>
    %351 = arith.cmpi sle, %218, %350 : vector<16x128xi32>
    %352 = arith.andi %349, %351 : vector<16x128xi1>
    %353 = arith.andi %352, %220 : vector<16x128xi1>
    %cst_80 = arith.constant 0.000000e+00 : f32
    %354 = vector.broadcast %cst_80 : f32 to vector<16x128xf32>
    %355 = arith.select %353, %347, %354 : vector<16x128xi1>, vector<16x128xf32>
    %c120_i32_81 = arith.constant 120 : i32
    %356 = tpu.dynamic_rotate %215 by %c120_i32_81 dim 1 : vector<16x128xf32>, i32 -> vector<16x128xf32>
    %c-8_i32_82 = arith.constant -8 : i32
    %357 = vector.broadcast %c-8_i32_82 : i32 to vector<16x128xi32>
    %358 = arith.cmpi sge, %218, %357 : vector<16x128xi32>
    %c23_i32 = arith.constant 23 : i32
    %359 = vector.broadcast %c23_i32 : i32 to vector<16x128xi32>
    %360 = arith.cmpi sle, %218, %359 : vector<16x128xi32>
    %361 = arith.andi %358, %360 : vector<16x128xi1>
    %362 = arith.andi %361, %220 : vector<16x128xi1>
    %cst_83 = arith.constant 0.000000e+00 : f32
    %363 = vector.broadcast %cst_83 : f32 to vector<16x128xf32>
    %364 = arith.select %362, %356, %363 : vector<16x128xi1>, vector<16x128xf32>
    %365 = tpu.concatenate %229, %238, %247, %256, %265, %274, %283, %292, %301, %310, %319, %328, %337, %346, %355, %364 in 0 : vector<16x128xf32>, vector<16x128xf32>, vector<16x128xf32>, vector<16x128xf32>, vector<16x128xf32>, vector<16x128xf32>, vector<16x128xf32>, vector<16x128xf32>, vector<16x128xf32>, vector<16x128xf32>, vector<16x128xf32>, vector<16x128xf32>, vector<16x128xf32>, vector<16x128xf32>, vector<16x128xf32>, vector<16x128xf32> -> vector<256x128xf32>
    %c0_84 = arith.constant 0 : index
    %c0_85 = arith.constant 0 : index
    %366 = vector.load %arg3[%c0_84, %c0_85] : memref<16x256xf32, #tpu.memory_space<vmem>>, vector<16x256xf32>
    %cst_86 = arith.constant dense<0.000000e+00> : vector<16x128xf32>
    %367 = tpu.matmul %366, %365, %cst_86 {dimension_numbers = #tpu.dot_dimension_numbers<[1], [0], [0], [1], [0, 0, 1, 1], [], []>} : vector<16x256xf32>, vector<256x128xf32>, vector<16x128xf32> -> vector<16x128xf32>
    %368 = vector.broadcast %5 : vector<16x1xf32> to vector<16x128xf32>
    %369 = arith.addf %367, %368 : vector<16x128xf32>
    %cst_87 = arith.constant 0.000000e+00 : f32
    %370 = vector.broadcast %cst_87 : f32 to vector<16x128xf32>
    %371 = arith.cmpf ogt, %369, %370 : vector<16x128xf32>
    %cst_88 = arith.constant 0.000000e+00 : f32
    %372 = vector.broadcast %cst_88 : f32 to vector<16x128xf32>
    %373 = arith.minimumf %369, %372 : vector<16x128xf32>
    %374 = math.exp %373 : vector<16x128xf32>
    %cst_89 = arith.constant 1.000000e+00 : f32
    %375 = vector.broadcast %cst_89 : f32 to vector<16x128xf32>
    %376 = arith.subf %374, %375 : vector<16x128xf32>
    %377 = arith.select %371, %369, %376 : vector<16x128xi1>, vector<16x128xf32>
    %378 = vector.extract_strided_slice %377 {offsets = [0, 0], sizes = [16, 64], strides = [1, 1]} : vector<16x128xf32> to vector<16x64xf32>
    %c0_90 = arith.constant 0 : index
    %c0_91 = arith.constant 0 : index
    %379 = vector.load %arg5[%c0_90, %c0_91] : memref<64x16xf32, #tpu.memory_space<vmem>>, vector<64x16xf32>
    %cst_92 = arith.constant dense<0.000000e+00> : vector<16x16xf32>
    %380 = tpu.matmul %378, %379, %cst_92 {dimension_numbers = #tpu.dot_dimension_numbers<[1], [0], [0], [1], [0, 0, 1, 1], [], []>} : vector<16x64xf32>, vector<64x16xf32>, vector<16x16xf32> -> vector<16x16xf32>
    %381 = vector.extract_strided_slice %0 {offsets = [64, 0], sizes = [16, 16], strides = [1, 1]} : vector<216x48xf32> to vector<16x16xf32>
    %382 = vector.extract_strided_slice %0 {offsets = [80, 0], sizes = [16, 16], strides = [1, 1]} : vector<216x48xf32> to vector<16x16xf32>
    %383 = vector.extract_strided_slice %0 {offsets = [96, 0], sizes = [16, 16], strides = [1, 1]} : vector<216x48xf32> to vector<16x16xf32>
    %384 = vector.extract_strided_slice %0 {offsets = [112, 0], sizes = [16, 16], strides = [1, 1]} : vector<216x48xf32> to vector<16x16xf32>
    %385 = vector.extract_strided_slice %0 {offsets = [128, 0], sizes = [8, 48], strides = [1, 1]} : vector<216x48xf32> to vector<8x48xf32>
    %386 = vector.extract_strided_slice %0 {offsets = [136, 0], sizes = [8, 24], strides = [1, 1]} : vector<216x48xf32> to vector<8x24xf32>
    %387 = vector.extract_strided_slice %0 {offsets = [144, 0], sizes = [8, 16], strides = [1, 1]} : vector<216x48xf32> to vector<8x16xf32>
    %388 = vector.extract_strided_slice %0 {offsets = [152, 0], sizes = [8, 1], strides = [1, 1]} : vector<216x48xf32> to vector<8x1xf32>
    %389 = vector.extract_strided_slice %0 {offsets = [160, 0], sizes = [8, 1], strides = [1, 1]} : vector<216x48xf32> to vector<8x1xf32>
    %390 = vector.extract_strided_slice %0 {offsets = [168, 0], sizes = [8, 1], strides = [1, 1]} : vector<216x48xf32> to vector<8x1xf32>
    %cst_93 = arith.constant dense<0.000000e+00> : vector<16x16xf32>
    %391 = tpu.matmul %380, %381, %cst_93 {dimension_numbers = #tpu.dot_dimension_numbers<[1], [0], [0], [1], [0, 0, 1, 1], [], []>} : vector<16x16xf32>, vector<16x16xf32>, vector<16x16xf32> -> vector<16x16xf32>
    %cst_94 = arith.constant dense<0.000000e+00> : vector<16x16xf32>
    %392 = tpu.matmul %380, %382, %cst_94 {dimension_numbers = #tpu.dot_dimension_numbers<[1], [0], [0], [1], [0, 0, 1, 1], [], []>} : vector<16x16xf32>, vector<16x16xf32>, vector<16x16xf32> -> vector<16x16xf32>
    %393 = tpu.concatenate %391, %380, %392 in 0 : vector<16x16xf32>, vector<16x16xf32>, vector<16x16xf32> -> vector<48x16xf32>
    %cst_95 = arith.constant dense<0.000000e+00> : vector<8x16xf32>
    %394 = tpu.matmul %385, %393, %cst_95 {dimension_numbers = #tpu.dot_dimension_numbers<[1], [0], [0], [1], [0, 0, 1, 1], [], []>} : vector<8x48xf32>, vector<48x16xf32>, vector<8x16xf32> -> vector<8x16xf32>
    %395 = vector.broadcast %388 : vector<8x1xf32> to vector<8x16xf32>
    %396 = arith.addf %394, %395 : vector<8x16xf32>
    %cst_96 = arith.constant dense<0.000000e+00> : vector<8x16xf32>
    %397 = tpu.matmul %387, %380, %cst_96 {dimension_numbers = #tpu.dot_dimension_numbers<[1], [0], [0], [1], [0, 0, 1, 1], [], []>} : vector<8x16xf32>, vector<16x16xf32>, vector<8x16xf32> -> vector<8x16xf32>
    %398 = vector.broadcast %389 : vector<8x1xf32> to vector<8x16xf32>
    %399 = arith.addf %397, %398 : vector<8x16xf32>
    %cst_97 = arith.constant 0.000000e+00 : f32
    %400 = vector.broadcast %cst_97 : f32 to vector<8x16xf32>
    %401 = arith.maximumf %396, %400 : vector<8x16xf32>
    %402 = arith.addf %401, %399 : vector<8x16xf32>
    %cst_98 = arith.constant dense<0.000000e+00> : vector<8x16xf32>
    %403 = tpu.matmul %402, %383, %cst_98 {dimension_numbers = #tpu.dot_dimension_numbers<[1], [0], [0], [1], [0, 0, 1, 1], [], []>} : vector<8x16xf32>, vector<16x16xf32>, vector<8x16xf32> -> vector<8x16xf32>
    %cst_99 = arith.constant dense<0.000000e+00> : vector<8x16xf32>
    %404 = tpu.matmul %402, %384, %cst_99 {dimension_numbers = #tpu.dot_dimension_numbers<[1], [0], [0], [1], [0, 0, 1, 1], [], []>} : vector<8x16xf32>, vector<16x16xf32>, vector<8x16xf32> -> vector<8x16xf32>
    %405 = tpu.concatenate %403, %402, %404 in 0 : vector<8x16xf32>, vector<8x16xf32>, vector<8x16xf32> -> vector<24x16xf32>
    %cst_100 = arith.constant dense<0.000000e+00> : vector<8x16xf32>
    %406 = tpu.matmul %386, %405, %cst_100 {dimension_numbers = #tpu.dot_dimension_numbers<[1], [0], [0], [1], [0, 0, 1, 1], [], []>} : vector<8x24xf32>, vector<24x16xf32>, vector<8x16xf32> -> vector<8x16xf32>
    %407 = vector.broadcast %390 : vector<8x1xf32> to vector<8x16xf32>
    %408 = arith.addf %406, %407 : vector<8x16xf32>
    %cst_101 = arith.constant 0.000000e+00 : f32
    %409 = vector.broadcast %cst_101 : f32 to vector<8x16xf32>
    %410 = arith.maximumf %408, %409 : vector<8x16xf32>
    %411 = arith.addf %410, %402 : vector<8x16xf32>
    %412 = vector.extract_strided_slice %0 {offsets = [176, 0], sizes = [16, 2], strides = [1, 1]} : vector<216x48xf32> to vector<16x2xf32>
    %413 = vector.extract_strided_slice %0 {offsets = [192, 0], sizes = [4, 16], strides = [1, 1]} : vector<216x48xf32> to vector<4x16xf32>
    %414 = vector.extract_strided_slice %0 {offsets = [200, 0], sizes = [4, 8], strides = [1, 1]} : vector<216x48xf32> to vector<4x8xf32>
    %415 = vector.extract_strided_slice %0 {offsets = [208, 0], sizes = [4, 1], strides = [1, 1]} : vector<216x48xf32> to vector<4x1xf32>
    %cst_102 = arith.constant dense<0.000000e+00> : vector<16x2xf32>
    %416 = tpu.matmul %380, %412, %cst_102 {dimension_numbers = #tpu.dot_dimension_numbers<[1], [0], [0], [1], [0, 0, 1, 1], [], []>} : vector<16x16xf32>, vector<16x2xf32>, vector<16x2xf32> -> vector<16x2xf32>
    %cst_103 = arith.constant dense<0.000000e+00> : vector<8x2xf32>
    %417 = tpu.matmul %411, %412, %cst_103 {dimension_numbers = #tpu.dot_dimension_numbers<[1], [0], [0], [1], [0, 0, 1, 1], [], []>} : vector<8x16xf32>, vector<16x2xf32>, vector<8x2xf32> -> vector<8x2xf32>
    %cst_104 = arith.constant dense<0.000000e+00> : vector<4x2xf32>
    %418 = tpu.matmul %413, %416, %cst_104 {dimension_numbers = #tpu.dot_dimension_numbers<[1], [0], [0], [1], [0, 0, 1, 1], [], []>} : vector<4x16xf32>, vector<16x2xf32>, vector<4x2xf32> -> vector<4x2xf32>
    %cst_105 = arith.constant dense<0.000000e+00> : vector<4x2xf32>
    %419 = tpu.matmul %414, %417, %cst_105 {dimension_numbers = #tpu.dot_dimension_numbers<[1], [0], [0], [1], [0, 0, 1, 1], [], []>} : vector<4x8xf32>, vector<8x2xf32>, vector<4x2xf32> -> vector<4x2xf32>
    %420 = arith.addf %418, %419 : vector<4x2xf32>
    %421 = vector.broadcast %415 : vector<4x1xf32> to vector<4x2xf32>
    %422 = arith.addf %420, %421 : vector<4x2xf32>
    %cst_106 = arith.constant dense<0xFF800000> : vector<2xf32>
    %423 = vector.multi_reduction <maximumf>, %422, %cst_106 [0] : vector<4x2xf32> to vector<2xf32>
    %424 = vector.shape_cast %423 : vector<2xf32> to vector<1x2xf32>
    %425 = vector.broadcast %424 : vector<1x2xf32> to vector<4x2xf32>
    %426 = arith.subf %422, %425 : vector<4x2xf32>
    %427 = math.exp %426 : vector<4x2xf32>
    %cst_107 = arith.constant dense<0.000000e+00> : vector<2xf32>
    %428 = vector.multi_reduction <add>, %427, %cst_107 [0] : vector<4x2xf32> to vector<2xf32>
    %429 = vector.shape_cast %428 : vector<2xf32> to vector<1x2xf32>
    %430 = math.log %429 : vector<1x2xf32>
    %431 = arith.addf %430, %424 : vector<1x2xf32>
    %432 = vector.broadcast %431 : vector<1x2xf32> to vector<4x2xf32>
    %433 = arith.subf %422, %432 : vector<4x2xf32>
    %c0_108 = arith.constant 0 : index
    %c0_109 = arith.constant 0 : index
    %434 = vector.load %arg6[%c0_108, %c0_109] : memref<4x2xf32, #tpu.memory_space<vmem>>, vector<4x2xf32>
    tpu.vector_store %arg6[%c0_108, %c0_109], %433 {strides = array<i32>} : memref<4x2xf32, #tpu.memory_space<vmem>>, vector<4x2xf32>,
    return
  }
  func.func @transform_0(%arg0: i32) -> (i32, i32) {
    %c0_i32 = arith.constant 0 : i32
    %c0_i32_0 = arith.constant 0 : i32
    %c0_i32_1 = arith.constant 0 : i32
    return %c0_i32, %c0_i32_0 : i32, i32
  }
  func.func @transform_1(%arg0: i32) -> (i32, i32) {
    %c0_i32 = arith.constant 0 : i32
    %c0_i32_0 = arith.constant 0 : i32
    %c0_i32_1 = arith.constant 0 : i32
    return %c0_i32, %c0_i32_0 : i32, i32
  }
  func.func @transform_2(%arg0: i32) -> (i32, i32) {
    %c0_i32 = arith.constant 0 : i32
    %c0_i32_0 = arith.constant 0 : i32
    %c0_i32_1 = arith.constant 0 : i32
    return %c0_i32, %c0_i32_0 : i32, i32
  }
  func.func @transform_3(%arg0: i32) -> (i32, i32) {
    %c0_i32 = arith.constant 0 : i32
    %c0_i32_0 = arith.constant 0 : i32
    %c0_i32_1 = arith.constant 0 : i32
    return %c0_i32, %c0_i32_0 : i32, i32
  }
  func.func @transform_4(%arg0: i32) -> (i32, i32) {
    %c0_i32 = arith.constant 0 : i32
    %c0_i32_0 = arith.constant 0 : i32
    %c0_i32_1 = arith.constant 0 : i32
    return %c0_i32, %c0_i32_0 : i32, i32
  }
  func.func @transform_5(%arg0: i32) -> (i32, i32) {
    %c0_i32 = arith.constant 0 : i32
    %c0_i32_0 = arith.constant 0 : i32
    %c0_i32_1 = arith.constant 0 : i32
    return %c0_i32, %c0_i32_0 : i32, i32
  }
}

</mosaic_0001>

<bundles_post_ra>
// kernel: _forward_impl.1
= control target key start
LH: loop header
LB: loop body
LE: loop exit
PB: predicated region body
PF: predicated region fallthrough
CT: control target
= control target key end

     0   :  { %v1725_v0 = vmov 2   ;;  %v1726_v2 = vmov 1   ;;  %vm59_vm0 = vcmask 1043456   ;;  %vm52_vm1 = vcmask 31744   ;;  %s1734_s27 = smov 6   ;;  %s1735_s28 = smov 7   ;;  %s2625_s1 = inlined_call_operand.vmem [shape: f32[216,48], index: 1, kind: input, shape index: {}]   ;;  %s2626_s0 = inlined_call_operand.vmem [shape: f32[4,256], index: 0, kind: input, shape index: {}]   ;;  %s2627_s3 = inlined_call_operand.vmem [shape: bf16[256,128], index: 3, kind: input, shape index: {}]   ;;  %s2628_s2 = inlined_call_operand.vmem [shape: f32[16,256], index: 2, kind: input, shape index: {}]   ;;  %s2629_s4 = inlined_call_operand.vmem [shape: f32[64,16], index: 4, kind: input, shape index: {}]   ;;  %s2630_s5 = inlined_call_operand.vmem [shape: f32[4,2], index: 5, kind: output, shape index: {}]  }
   0x1   :  { %1679 = vset.pattern.permute.xlu0 %v1725_v0  ;;  %v1789_v1 = vld [vmem:[%s2625_s1 + $0x18] sm:$0xff]  ;;  %1676 = vset.pattern.permute.xlu1 %v1726_v2  ;;  %v1794_v3 = vld [vmem:[%s2625_s1 + $0x10] sm:$0xff]  ;;  %v47_v4 = vld [vmem:[%s2626_s0] sm:$0xff]  ;;  %v1727_v8 = vmov 3   ;;  %v1728_v10 = vmov 0   ;;  %v1729_v11 = vmov 7   ;;  %v110_v39 = vlaneseq }
   0x2   :  { %223 = vperm.xlu0 %1679, %v1789_v1   ;;  %180 = vperm.xlu1 %1676, %v1794_v3   ;;  %49 = vst [vmem:[#allocation1] ss:$2 sm:$0xff] %v47_v4  ;;  %v20_v5 = vld [vmem:[%s2625_s1] sm:$0xff]  ;;  %v21_v9 = vld [vmem:[%s2625_s1 + $0x8] sm:$0xff]  ;;  %v1730_v12 = vmov 4   ;;  %v1731_v13 = vmov 5  }
   0x3   :  { %1675 = vset.pattern.permute.xlu2 %v1728_v10  ;;  %v1732_v14 = vmov 6   ;;  %v1733_v15 = vmov 8   ;;  %s1736_s29 = smov 3   ;;  %s1737_s30 = smov 5   ;;  %v1743_v26 = vmov 9   ;;  %v1945_v40 = vand.u32 127, %v110_v39 }
   0x4   :  { %140 = vperm.xlu2 %1675, %v1794_v3   ;;  %s1738_s6 = smov 4   ;;  %s1739_s7 = smov 2   ;;  %v1745_v43 = vmov 10   ;;  %v1747_v54 = vmov 11  }
   0x5   :  { %s1740_s8 = smov 1   ;;  %s1741_s9 = smov 127   ;;  %vm2631_vm2 = vcmp.lt.s32.totalorder %v1945_v40, 3  ;;  %v112_v47 = vadd.s32 128, %v1945_v40  ;;  %vm123_vm3 = vcmp.lt.s32.totalorder %v1945_v40, 7  ;;  %vm2635_vm4 = vcmp.ge.s32.totalorder %v1945_v40, 7 }
   0x6   :  { %s1742_s10 = smov 126   ;;  %s1744_s11 = smov 125   ;;  %vm164_vm6 = vcmp.lt.s32.totalorder %v1945_v40, 6  ;;  %vm169_vm7 = vcmp.ge.s32.totalorder %v1945_v40, 6  ;;  %vm203_vm9 = vcmp.lt.s32.totalorder %v1945_v40, 5  ;;  %vm2633_vm10 = vcmp.ge.s32.totalorder %v1945_v40, 5 }
   0x7   :  { %s1746_s12 = smov 124   ;;  %v1978_v53 = vand.u32 127, %v112_v47  ;;  %s1748_s13 = smov 123   ;;  %vm286_vm12 = vcmp.ge.s32.totalorder %v1945_v40, 3  ;;  %vm242_vm14 = vcmp.lt.s32.totalorder %v1945_v40, 4  ;;  %vm2638_vm15 = vcmp.lt.s32.totalorder %v1945_v40, 127 }
   0x8   :  { %s1750_s14 = smov 122   ;;  %s1752_s15 = smov 121  }
   0x9   :  { %v50_v6 = vld.sshfl [vmem:[#allocation1] sm:$0xff pattern:$0x75316420]  ;;  %v51_v7 = vld.sshfl [vmem:[#allocation1 + $0x8] sm:$0xff pattern:$0x75316420] }
   0xa   :  { %1504 = vmatpush.msk.msra.mxu0 %vm59_vm0, %v50_v6  ;;  %1507 = vmatpush.msk.msra.mxu1 %vm59_vm0, %v51_v7  ;;  %vm2634_vm5 = vcmp.ge.s32.totalorder %v1978_v53, 7  ;;  %vm170_vm8 = vcmp.ge.s32.totalorder %v1978_v53, 6  ;;  %vm2632_vm11 = vcmp.ge.s32.totalorder %v1978_v53, 5  ;;  %vm287_vm13 = vcmp.ge.s32.totalorder %v1978_v53, 3  ;;  %s1754_s16 = smov 120  }
   0xb   :  { %1505 = vmatmul.msk.f32.vlgmr.msra.gmra.mxu0 %vm52_vm1, %v20_v5  ;;  %1508 = vmatmul.msk.f32.vlgmr.msra.gmra.mxu1 %vm52_vm1, %v20_v5  ;;  %vm320_vm0 = vcmp.lt.s32.totalorder %v1945_v40, 2 }
   0xc   :  { %1680 = vset.pattern.permute.xlu0 %v1727_v8  ;;  %1681 = vset.pattern.permute.xlu1 %v1727_v8 }
   0xd   :  { %258 = vperm.xlu0 %1680, %v1794_v3   ;;  %262 = vperm.xlu1 %1681, %v1789_v1  }
   0xe   :  { %1677 = vset.pattern.permute.xlu2 %v1726_v2 }
   0xf   :  { %184 = vperm.xlu2 %1677, %v1789_v1  }
  0x13   :  { %1509 = vmatmul.msk.f32.gmra.mxu1 %vm52_vm1, %v21_v9  ;;  %1506 = vmatmul.msk.f32.gmra.mxu0 %vm52_vm1, %v21_v9  ;;  %vm247_vm1 = vcmp.ge.s32.totalorder %v1945_v40, 4 }
  0x15   :  { %1688 = vset.pattern.permute.xlu0 %v1729_v11  ;;  %1682 = vset.pattern.permute.xlu1 %v1730_v12 }
  0x16   :  { %401 = vperm.xlu0 %1688, %v1794_v3   ;;  %297 = vperm.xlu1 %1682, %v1794_v3  }
  0x17   :  { %1678 = vset.pattern.permute.xlu2 %v1725_v0 }
  0x18   :  { %219 = vperm.xlu2 %1678, %v1794_v3  }
  0x1e   :  { %1684 = vset.pattern.permute.xlu1 %v1731_v13  ;;  %1689 = vset.pattern.permute.xlu0 %v1728_v10 }
  0x1f   :  { %336 = vperm.xlu1 %1684, %v1794_v3   ;;  %145 = vperm.xlu0 %1689, %v1789_v1  }
  0x20   :  { %1683 = vset.pattern.permute.xlu2 %v1730_v12 }
  0x21   :  { %301 = vperm.xlu2 %1683, %v1789_v1  }
  0x27   :  { %1686 = vset.pattern.permute.xlu1 %v1732_v14 }
  0x28   :  { %375 = vperm.xlu1 %1686, %v1794_v3  }
  0x29   :  { %1685 = vset.pattern.permute.xlu2 %v1731_v13 }
  0x2a   :  { %340 = vperm.xlu2 %1685, %v1789_v1  }
  0x30   :  { %1690 = vset.pattern.permute.xlu1 %v1729_v11 }
  0x31   :  { %405 = vperm.xlu1 %1690, %v1789_v1  }
  0x32   :  { %1687 = vset.pattern.permute.xlu2 %v1732_v14 }
  0x33   :  { %379 = vperm.xlu2 %1687, %v1789_v1  }
  0x39   :  { %1691 = vset.pattern.permute.xlu1 %v1733_v15 }
  0x3a   :  { %440 = vperm.xlu1 %1691, %v1794_v3  }
  0x3b   :  { %1692 = vset.pattern.permute.xlu2 %v1733_v15 }
  0x3c   :  { %444 = vperm.xlu2 %1692, %v1789_v1  }
  0x42   :  { %1693 = vset.pattern.permute.xlu1 %v1743_v26 }
  0x44   :  { %1694 = vset.pattern.permute.xlu2 %v1743_v26 }
  0x5e   :  { %v1851_v18 = vpop.permute.xlu2 %140 }
  0x69   :  { %v1861_v20 = vpop.permute.xlu2 %184 }
  0x72   :  { %v1873_v21 = vpop.permute.xlu2 %219 }
  0x74   :  { %v1879_v23 = vpop.permute.xlu1 %180  ;;  %v1915_v30 = vpop.permute.xlu0 %223 }
  0x7b   :  { %v1887_v24 = vpop.permute.xlu2 %301 }
  0x7f   :  { %v1893_v25 = vpop.permute.xlu1 %262  ;;  %v1927_v33 = vpop.permute.xlu0 %258 }
  0x84   :  { %v1897_v27 = vpop.permute.xlu2 %340 }
  0x88   :  { %v1829_v16 = vpop.f32.mrf.mxu0  ;;  %v1831_v17 = vpop.f32.mrf.mxu1 }
  0x89   :  { %156 = vrot.lane.b32.xlu2 %v1829_v16, %s1734_s27  ;;  %115 = vrot.lane.b32.xlu0 %v1829_v16, %s1735_s28  ;;  %v1905_v28 = vpop.permute.xlu1 %297  ;;  %v1937_v36 = vpop.permute.xlu0 %401 }
  0x8a   :  { %119 = vrot.lane.b32.xlu1 %v1831_v17, %s1735_s28 }
  0x8d   :  { %v1907_v29 = vpop.permute.xlu2 %379 }
  0x90   :  { %v1859_v19 = vpop.f32.mrf.mxu1  ;;  %v1877_v22 = vpop.f32.mrf.mxu0 }
  0x91   :  { %273 = vrot.lane.b32.xlu2 %v1829_v16, %s1736_s29  ;;  %160 = vrot.lane.b32.xlu0 %v1831_v17, %s1734_s27  ;;  %v1917_v31 = vpop.permute.xlu1 %336  ;;  %v1951_v41 = vpop.permute.xlu0 %145 }
  0x92   :  { %195 = vrot.lane.b32.xlu1 %v1829_v16, %s1737_s30 }
  0x96   :  { %v1923_v32 = vpop.permute.xlu2 %444 }
  0x99   :  { %277 = vrot.lane.b32.xlu2 %v1831_v17, %s1736_s29  ;;  %199 = vrot.lane.b32.xlu0 %v1831_v17, %s1737_s30 }
  0x9a   :  { %234 = vrot.lane.b32.xlu1 %v1829_v16, %s1738_s6  ;;  %v1929_v34 = vpop.permute.xlu1 %375 }
  0xa1   :  { %316 = vrot.lane.b32.xlu2 %v1831_v17, %s1739_s7  ;;  %312 = vrot.lane.b32.xlu0 %v1829_v16, %s1739_s7 }
  0xa2   :  { %238 = vrot.lane.b32.xlu1 %v1831_v17, %s1738_s6 }
  0xa3   :  { %v1942_v37 = vpop.permute.xlu1 %405 }
  0xa9   :  { %355 = vrot.lane.b32.xlu2 %v1831_v17, %s1740_s8  ;;  %351 = vrot.lane.b32.xlu0 %v1829_v16, %s1740_s8 }
  0xaa   :  { %121 = vrot.lane.b32.xlu1 %v1859_v19, %s1735_s28 }
  0xac   :  { %v1956_v42 = vpop.permute.xlu1 %440 }
  0xb1   :  { %416 = vrot.lane.b32.xlu2 %v1829_v16, %s1741_s9  ;;  %455 = vrot.lane.b32.xlu0 %v1829_v16, %s1742_s10 }
  0xb2   :  { %162 = vrot.lane.b32.xlu1 %v1859_v19, %s1734_s27 }
  0xb9   :  { %420 = vrot.lane.b32.xlu2 %v1831_v17, %s1741_s9  ;;  %117 = vrot.lane.b32.xlu0 %v1877_v22, %s1735_s28 }
  0xba   :  { %201 = vrot.lane.b32.xlu1 %v1859_v19, %s1737_s30 }
  0xc1   :  { %459 = vrot.lane.b32.xlu2 %v1831_v17, %s1742_s10  ;;  %279 = vrot.lane.b32.xlu0 %v1859_v19, %s1736_s29 }
  0xc2   :  { %275 = vrot.lane.b32.xlu1 %v1877_v22, %s1736_s29 }
  0xc9   :  { %158 = vrot.lane.b32.xlu2 %v1877_v22, %s1734_s27  ;;  %318 = vrot.lane.b32.xlu0 %v1859_v19, %s1739_s7 }
  0xca   :  { %314 = vrot.lane.b32.xlu1 %v1877_v22, %s1739_s7 }
  0xd1   :  { %197 = vrot.lane.b32.xlu2 %v1877_v22, %s1737_s30  ;;  %357 = vrot.lane.b32.xlu0 %v1859_v19, %s1740_s8 }
  0xd2   :  { %353 = vrot.lane.b32.xlu1 %v1877_v22, %s1740_s8 }
  0xd9   :  { %236 = vrot.lane.b32.xlu2 %v1877_v22, %s1738_s6  ;;  %422 = vrot.lane.b32.xlu0 %v1859_v19, %s1741_s9 }
  0xda   :  { %418 = vrot.lane.b32.xlu1 %v1877_v22, %s1741_s9 }
  0xe1   :  { %240 = vrot.lane.b32.xlu2 %v1859_v19, %s1738_s6  ;;  %461 = vrot.lane.b32.xlu0 %v1859_v19, %s1742_s10 }
  0xe2   :  { %457 = vrot.lane.b32.xlu1 %v1877_v22, %s1742_s10 }
  0xe3   :  { %v157_v35 = vpop.permute.xlu2 %156 }
  0xe9   :  { %483 = vperm.xlu2 %1694, %v1789_v1   ;;  %494 = vrot.lane.b32.xlu0 %v1829_v16, %s1744_s11 }
  0xea   :  { %479 = vperm.xlu1 %1693, %v1794_v3  }
  0xeb   :  { %v274_v38 = vpop.permute.xlu2 %273 }
  0xf1   :  { %498 = vrot.lane.b32.xlu2 %v1831_v17, %s1744_s11  ;;  %500 = vrot.lane.b32.xlu0 %v1859_v19, %s1744_s11 }
  0xf2   :  { %496 = vrot.lane.b32.xlu1 %v1877_v22, %s1744_s11  ;;  %1696 = vset.pattern.permute.xlu2 %v1745_v43 }
  0xf3   :  { %v278_v44 = vpop.permute.xlu2 %277  ;;  %1695 = vset.pattern.permute.xlu1 %v1745_v43 }
  0xf4   :  { %v1960_v45 = vsel %vm2631_vm2, %v274_v38, %v278_v44  ;;  %v1964_v46 = vsel %vm2631_vm2, %v278_v44, %v274_v38  ;;  %vm248_vm2 = vcmp.ge.s32.totalorder %v1978_v53, 4 }
  0xf5   :  { %v292_v38 = vsel %vm286_vm12, %v1964_v46, 0.0  ;;  %v293_v39 = vsel %vm287_vm13, %v1960_v45, 0.0 }
  0xf9   :  { %522 = vperm.xlu2 %1696, %v1789_v1   ;;  %533 = vrot.lane.b32.xlu0 %v1829_v16, %s1746_s12 }
  0xfa   :  { %518 = vperm.xlu1 %1695, %v1794_v3  }
  0xfb   :  { %v1972_v48 = vpop.permute.xlu2 %316  ;;  %v116_v49 = vpop.permute.xlu0 %115 }
  0xfc   :  { %v120_v50 = vpop.permute.xlu1 %119 }
  0xfd   :  { %v124_v51 = vsel %vm123_vm3, %v116_v49, %v120_v50  ;;  %v126_v52 = vsel %vm123_vm3, %v120_v50, %v116_v49 }
  0xfe   :  { %v134_v55 = vsel %vm2635_vm4, %v126_v52, 0.0  ;;  %v135_v56 = vsel %vm2634_vm5, %v124_v51, 0.0  ;;  %vm325_vm5 = vcmp.ge.s32.totalorder %v1945_v40, 2  ;;  %vm326_vm4 = vcmp.ge.s32.totalorder %v1978_v53, 2 }
  0xff   :  { %v148_v0 = vmul.f32 %v1851_v18, %v134_v55  ;;  %v149_v2 = vmul.f32 %v1851_v18, %v135_v56 }
 0x101   :  { %537 = vrot.lane.b32.xlu2 %v1831_v17, %s1746_s12  ;;  %539 = vrot.lane.b32.xlu0 %v1859_v19, %s1746_s12 }
 0x102   :  { %535 = vrot.lane.b32.xlu1 %v1877_v22, %s1746_s12  ;;  %1698 = vset.pattern.permute.xlu2 %v1747_v54 }
 0x103   :  { %v1995_v57 = vpop.permute.xlu2 %355  ;;  %v161_v58 = vpop.permute.xlu0 %160  ;;  %1697 = vset.pattern.permute.xlu1 %v1747_v54 }
 0x104   :  { %v196_v59 = vpop.permute.xlu1 %195  ;;  %v165_v60 = vsel %vm164_vm6, %v157_v35, %v161_v58  ;;  %v167_v61 = vsel %vm164_vm6, %v161_v58, %v157_v35 }
 0x105   :  { %v175_v62 = vsel %vm169_vm7, %v167_v61, 0.0  ;;  %v176_v63 = vsel %vm170_vm8, %v165_v60, 0.0 }
 0x106   :  { %v187_v4 = vmul.f32 %v1879_v23, %v175_v62  ;;  %v188_v5 = vmul.f32 %v1879_v23, %v176_v63  ;;  %v304_v62 = vmul.f32 %v1905_v28, %v292_v38 }
 0x108   :  { %v191_v6 = vadd.f32 %v187_v4, %v148_v0  ;;  %v192_v7 = vadd.f32 %v188_v5, %v149_v2  ;;  %v305_v2 = vmul.f32 %v1905_v28, %v293_v39 }
 0x109   :  { %561 = vperm.xlu2 %1698, %v1789_v1   ;;  %572 = vrot.lane.b32.xlu0 %v1829_v16, %s1748_s13 }
 0x10a   :  { %557 = vperm.xlu1 %1697, %v1794_v3  }
 0x10b   :  { %v417_v8 = vpop.permute.xlu2 %416  ;;  %v200_v9 = vpop.permute.xlu0 %199 }
 0x10c   :  { %v235_v11 = vpop.permute.xlu1 %234  ;;  %v204_v12 = vsel %vm203_vm9, %v196_v59, %v200_v9  ;;  %v206_v13 = vsel %vm203_vm9, %v200_v9, %v196_v59 }
 0x10d   :  { %v214_v14 = vsel %vm2633_vm10, %v206_v13, 0.0  ;;  %v215_v15 = vsel %vm2632_vm11, %v204_v12, 0.0  ;;  %vm2637_vm11 = vcmp.le.s32.totalorder %v1945_v40, 126  ;;  %vm2636_vm10 = vcmp.le.s32.totalorder %v1978_v53, 126 }
 0x10e   :  { %v226_v18 = vmul.f32 %v1873_v21, %v214_v14  ;;  %v227_v23 = vmul.f32 %v1873_v21, %v215_v15  ;;  %v1749_v21 = vmov 12  }
 0x110   :  { %v230_v26 = vadd.f32 %v226_v18, %v191_v6  ;;  %v231_v35 = vadd.f32 %v227_v23, %v192_v7 }
 0x111   :  { %576 = vrot.lane.b32.xlu2 %v1831_v17, %s1748_s13  ;;  %578 = vrot.lane.b32.xlu0 %v1859_v19, %s1748_s13 }
 0x112   :  { %574 = vrot.lane.b32.xlu1 %v1877_v22, %s1748_s13  ;;  %1700 = vset.pattern.permute.xlu2 %v1749_v21 }
 0x113   :  { %v421_v43 = vpop.permute.xlu2 %420  ;;  %v313_v44 = vpop.permute.xlu0 %312  ;;  %1699 = vset.pattern.permute.xlu1 %v1749_v21  ;;  %v408_v21 = vmul.f32 %v1937_v36, %v1829_v16 }
 0x114   :  { %v239_v47 = vpop.permute.xlu1 %238  ;;  %v425_v49 = vsel %vm2638_vm15, %v417_v8, %v421_v43  ;;  %v427_v50 = vsel %vm2638_vm15, %v421_v43, %v417_v8  ;;  %v321_v46 = vsel %vm320_vm0, %v313_v44, %v1972_v48  ;;  %v323_v45 = vsel %vm320_vm0, %v1972_v48, %v313_v44 }
 0x115   :  { %v243_v51 = vsel %vm242_vm14, %v235_v11, %v239_v47  ;;  %v245_v52 = vsel %vm242_vm14, %v239_v47, %v235_v11  ;;  %v435_v54 = vsel %vm2637_vm11, %v425_v49, 0.0  ;;  %v436_v55 = vsel %vm2636_vm10, %v427_v50, 0.0 }
 0x116   :  { %v253_v56 = vsel %vm247_vm1, %v245_v52, 0.0  ;;  %v254_v58 = vsel %vm248_vm2, %v243_v51, 0.0  ;;  %v447_v48 = vmul.f32 %v1956_v42, %v435_v54  ;;  %v448_v59 = vmul.f32 %v1956_v42, %v436_v55 }
 0x117   :  { %v265_v60 = vmul.f32 %v1927_v33, %v253_v56  ;;  %v266_v61 = vmul.f32 %v1927_v33, %v254_v58  ;;  %v331_v63 = vsel %vm325_vm5, %v323_v45, 0.0  ;;  %v332_v0 = vsel %vm326_vm4, %v321_v46, 0.0 }
 0x118   :  { %vm359_vm10 = vcmp.lt.s32.totalorder %v1945_v40, 1  ;;  %vm364_vm11 = vcmp.ge.s32.totalorder %v1945_v40, 1  ;;  %vm2639_vm15 = vcmp.ge.s32.totalorder %v1978_v53, 1  ;;  %v343_v28 = vmul.f32 %v1917_v31, %v331_v63 }
 0x119   :  { %v269_v4 = vadd.f32 %v265_v60, %v230_v26  ;;  %v270_v5 = vadd.f32 %v266_v61, %v231_v35  ;;  %600 = vperm.xlu2 %1700, %v1789_v1   ;;  %611 = vrot.lane.b32.xlu0 %v1829_v16, %s1750_s14  ;;  %v344_v6 = vmul.f32 %v1917_v31, %v332_v0 }
 0x11a   :  { %596 = vperm.xlu1 %1699, %v1794_v3  }
 0x11b   :  { %v308_v33 = vadd.f32 %v304_v62, %v269_v4  ;;  %v309_v42 = vadd.f32 %v305_v2, %v270_v5  ;;  %v460_v7 = vpop.permute.xlu2 %459  ;;  %v352_v8 = vpop.permute.xlu0 %351 }
 0x11c   :  { %v122_v9 = vpop.permute.xlu1 %121  ;;  %v360_v11 = vsel %vm359_vm10, %v352_v8, %v1995_v57  ;;  %v362_v12 = vsel %vm359_vm10, %v1995_v57, %v352_v8  ;;  %v409_v57 = vmul.f32 %v1937_v36, %v1831_v17  ;;  %v1753_v8 = vmov 14  }
 0x11d   :  { %v347_v13 = vadd.f32 %v343_v28, %v308_v33  ;;  %v348_v14 = vadd.f32 %v344_v6, %v309_v42  ;;  %v370_v15 = vsel %vm364_vm11, %v362_v12, 0.0  ;;  %v371_v18 = vsel %vm2639_vm15, %v360_v11, 0.0 }
 0x11e   :  { %v382_v31 = vmul.f32 %v1929_v34, %v370_v15  ;;  %v383_v23 = vmul.f32 %v1929_v34, %v371_v18  ;;  %vm2640_vm15 = vcmp.lt.s32.totalorder %v1945_v40, 126  ;;  %v1751_v34 = vmov 13  }
 0x120   :  { %v386_v26 = vadd.f32 %v382_v31, %v347_v13  ;;  %v387_v35 = vadd.f32 %v383_v23, %v348_v14 }
 0x121   :  { %615 = vrot.lane.b32.xlu2 %v1831_v17, %s1750_s14  ;;  %617 = vrot.lane.b32.xlu0 %v1859_v19, %s1750_s14 }
 0x122   :  { %613 = vrot.lane.b32.xlu1 %v1877_v22, %s1750_s14  ;;  %1702 = vset.pattern.permute.xlu2 %v1751_v34  ;;  %v412_v38 = vadd.f32 %v408_v21, %v386_v26  ;;  %v413_v39 = vadd.f32 %v409_v57, %v387_v35 }
 0x123   :  { %v456_v43 = vpop.permute.xlu0 %455  ;;  %v159_v44 = vpop.permute.xlu2 %158  ;;  %1701 = vset.pattern.permute.xlu1 %v1751_v34 }
 0x124   :  { %v163_v47 = vpop.permute.xlu1 %162  ;;  %v2115_v36 = vsel %vm2640_vm15, %v456_v43, %v460_v7  ;;  %v2119_v49 = vsel %vm2640_vm15, %v460_v7, %v456_v43  ;;  %v2121_v50 = vadd.f32 %v447_v48, %v412_v38  ;;  %v2123_v46 = vadd.f32 %v448_v59, %v413_v39 }
 0x125   :  { %v166_v45 = vsel %vm164_vm6, %v159_v44, %v163_v47  ;;  %v168_v51 = vsel %vm164_vm6, %v163_v47, %v159_v44  ;;  %vm2641_vm6 = vcmp.ge.s32.totalorder %v1945_v40, 7  ;;  %vm2644_vm15 = vcmp.ge.s32.totalorder %v1978_v53, 5 }
 0x126   :  { %v177_v52 = vsel %vm169_vm7, %v168_v51, 0.0  ;;  %v178_v54 = vsel %vm170_vm8, %v166_v45, 0.0  ;;  %vm2642_vm7 = vcmp.ge.s32.totalorder %v1978_v53, 7  ;;  %vm2643_vm8 = vcmp.ge.s32.totalorder %v1945_v40, 5 }
 0x127   :  { %v189_v58 = vmul.f32 %v1861_v20, %v177_v52  ;;  %v190_v48 = vmul.f32 %v1861_v20, %v178_v54 }
 0x129   :  { %639 = vperm.xlu2 %1702, %v1789_v1   ;;  %650 = vrot.lane.b32.xlu0 %v1829_v16, %s1752_s15 }
 0x12a   :  { %635 = vperm.xlu1 %1701, %v1794_v3  }
 0x12b   :  { %v198_v55 = vpop.permute.xlu2 %197  ;;  %v118_v56 = vpop.permute.xlu0 %117 }
 0x12c   :  { %v202_v59 = vpop.permute.xlu1 %201  ;;  %v125_v60 = vsel %vm123_vm3, %v118_v56, %v122_v9  ;;  %v127_v61 = vsel %vm123_vm3, %v122_v9, %v118_v56  ;;  %vm2645_vm3 = vcmp.lt.s32.totalorder %v1945_v40, 3 }
 0x12d   :  { %v205_v62 = vsel %vm203_vm9, %v198_v55, %v202_v59  ;;  %v207_v63 = vsel %vm203_vm9, %v202_v59, %v198_v55  ;;  %v136_v0 = vsel %vm2641_vm6, %v127_v61, 0.0  ;;  %v137_v2 = vsel %vm2642_vm7, %v125_v60, 0.0  ;;  %vm2646_vm9 = vmmov %vm2645_vm3 }
 0x12e   :  { %v216_v20 = vsel %vm2643_vm8, %v207_v63, 0.0  ;;  %v217_v4 = vsel %vm2644_vm15, %v205_v62, 0.0  ;;  %v150_v5 = vmul.f32 %v1951_v41, %v136_v0  ;;  %v151_v33 = vmul.f32 %v1951_v41, %v137_v2  ;;  %v24_v0 = vld [vmem:[%s2625_s1 + $0x20] sm:$0xff] }
 0x12f   :  { %v228_v42 = vmul.f32 %v1915_v30, %v216_v20  ;;  %v229_v28 = vmul.f32 %v1915_v30, %v217_v4  ;;  %vm510_vm6 = vcmp.le.s32.totalorder %v1978_v53, 124  ;;  %vm541_vm7 = vcmp.lt.s32.totalorder %v1945_v40, 124 }
 0x130   :  { %v193_v6 = vadd.f32 %v189_v58, %v150_v5  ;;  %v194_v7 = vadd.f32 %v190_v48, %v151_v33  ;;  %v1755_v48 = vmov 15   ;;  %v411_v5 = vmul.f32 %v1942_v37, %v1859_v19 }
 0x131   :  { %654 = vrot.lane.b32.xlu2 %v1831_v17, %s1752_s15  ;;  %656 = vrot.lane.b32.xlu0 %v1859_v19, %s1752_s15  ;;  %vm548_vm8 = vcmp.le.s32.totalorder %v1945_v40, 123 }
 0x132   :  { %652 = vrot.lane.b32.xlu1 %v1877_v22, %s1752_s15  ;;  %1704 = vset.pattern.permute.xlu2 %v1753_v8  ;;  %v232_v9 = vadd.f32 %v228_v42, %v193_v6  ;;  %v233_v11 = vadd.f32 %v229_v28, %v194_v7  ;;  %v410_v28 = vmul.f32 %v1942_v37, %v1877_v22  ;;  %v25_v37 = vld [vmem:[%s2625_s1 + $0x28] sm:$0xff] }
 0x133   :  { %v237_v41 = vpop.permute.xlu2 %236  ;;  %v280_v12 = vpop.permute.xlu0 %279  ;;  %1703 = vset.pattern.permute.xlu1 %v1753_v8 }
 0x134   :  { %v276_v13 = vpop.permute.xlu1 %275 }
 0x135   :  { %v283_v30 = vsel %vm2645_vm3, %v276_v13, %v280_v12  ;;  %v285_v14 = vsel %vm2646_vm9, %v280_v12, %v276_v13  ;;  %vm549_vm3 = vcmp.le.s32.totalorder %v1978_v53, 123  ;;  %vm580_vm9 = vcmp.lt.s32.totalorder %v1945_v40, 123 }
 0x136   :  { %v294_v31 = vsel %vm286_vm12, %v285_v14, 0.0  ;;  %v295_v23 = vsel %vm287_vm13, %v283_v30, 0.0  ;;  %vm470_vm12 = vcmp.le.s32.totalorder %v1945_v40, 125  ;;  %vm471_vm13 = vcmp.le.s32.totalorder %v1978_v53, 125 }
 0x137   :  { %v306_v45 = vmul.f32 %v1887_v24, %v294_v31  ;;  %v307_v51 = vmul.f32 %v1887_v24, %v295_v23 }
 0x139   :  { %678 = vperm.xlu2 %1704, %v1789_v1   ;;  %689 = vrot.lane.b32.xlu0 %v1829_v16, %s1754_s16 }
 0x13a   :  { %674 = vperm.xlu1 %1703, %v1794_v3  }
 0x13b   :  { %v241_v15 = vpop.permute.xlu2 %240  ;;  %v319_v18 = vpop.permute.xlu0 %318 }
 0x13c   :  { %v315_v26 = vpop.permute.xlu1 %314  ;;  %v244_v35 = vsel %vm242_vm14, %v237_v41, %v241_v15  ;;  %v246_v21 = vsel %vm242_vm14, %v241_v15, %v237_v41  ;;  %vm2652_vm14 = vcmp.lt.s32.totalorder %v1945_v40, 126 }
 0x13d   :  { %v255_v16 = vsel %vm247_vm1, %v246_v21, 0.0  ;;  %v256_v57 = vsel %vm248_vm2, %v244_v35, 0.0  ;;  %v322_v34 = vsel %vm320_vm0, %v315_v26, %v319_v18  ;;  %v324_v38 = vsel %vm320_vm0, %v319_v18, %v315_v26  ;;  %vm2653_vm15 = vmmov %vm2652_vm14 }
 0x13e   :  { %v267_v39 = vmul.f32 %v1893_v25, %v255_v16  ;;  %v268_v43 = vmul.f32 %v1893_v25, %v256_v57  ;;  %v333_v44 = vsel %vm325_vm5, %v324_v38, 0.0  ;;  %v334_v47 = vsel %vm326_vm4, %v322_v34, 0.0 }
 0x13f   :  { %v345_v55 = vmul.f32 %v1897_v27, %v333_v44  ;;  %v346_v58 = vmul.f32 %v1897_v27, %v334_v47  ;;  %vm2647_vm2 = vcmp.ge.s32.totalorder %v1978_v53, 1  ;;  %vm2648_vm4 = vcmp.lt.s32.totalorder %v1945_v40, 127 }
 0x140   :  { %v271_v52 = vadd.f32 %v267_v39, %v232_v9  ;;  %v272_v54 = vadd.f32 %v268_v43, %v233_v11  ;;  %vm2649_vm5 = vmmov %vm2648_vm4  ;;  %vm502_vm0 = vcmp.lt.s32.totalorder %v1945_v40, 125  ;;  %v474_v57 = vsel %vm470_vm12, %v2115_v36, 0.0 }
 0x141   :  { %693 = vrot.lane.b32.xlu2 %v1831_v17, %s1754_s16  ;;  %695 = vrot.lane.b32.xlu0 %v1859_v19, %s1754_s16  ;;  %v475_v34 = vsel %vm471_vm13, %v2119_v49, 0.0  ;;  %vm509_vm1 = vcmp.le.s32.totalorder %v1945_v40, 124 }
 0x142   :  { %v310_v25 = vadd.f32 %v306_v45, %v271_v52  ;;  %v311_v56 = vadd.f32 %v307_v51, %v272_v54  ;;  %691 = vrot.lane.b32.xlu1 %v1877_v22, %s1754_s16  ;;  %1706 = vset.pattern.permute.xlu2 %v1755_v48 }
 0x143   :  { %v358_v24 = vpop.permute.xlu0 %357  ;;  %1705 = vset.pattern.permute.xlu1 %v1755_v48  ;;  %v484_v2 = vpop.permute.xlu2 %483 }
 0x144   :  { %v349_v59 = vadd.f32 %v345_v55, %v310_v25  ;;  %v350_v60 = vadd.f32 %v346_v58, %v311_v56  ;;  %v354_v61 = vpop.permute.xlu1 %353 }
 0x145   :  { %v361_v17 = vsel %vm359_vm10, %v354_v61, %v358_v24  ;;  %v363_v62 = vsel %vm359_vm10, %v358_v24, %v354_v61  ;;  %vm2650_vm10 = vcmp.le.s32.totalorder %v1945_v40, 126 }
 0x146   :  { %v372_v63 = vsel %vm364_vm11, %v363_v62, 0.0  ;;  %v373_v27 = vsel %vm2647_vm2, %v361_v17, 0.0  ;;  %vm2651_vm11 = vcmp.le.s32.totalorder %v1978_v53, 126  ;;  %vm587_vm2 = vcmp.le.s32.totalorder %v1945_v40, 122 }
 0x147   :  { %v384_v20 = vmul.f32 %v1907_v29, %v372_v63  ;;  %v385_v4 = vmul.f32 %v1907_v29, %v373_v27 }
 0x149   :  { %v388_v33 = vadd.f32 %v384_v20, %v349_v59  ;;  %v389_v42 = vadd.f32 %v385_v4, %v350_v60  ;;  %730 = vperm.xlu0 %1689, %v24_v0   ;;  %717 = vperm.xlu2 %1706, %v1789_v1  }
 0x14a   :  { %713 = vperm.xlu1 %1705, %v1794_v3  }
 0x14b   :  { %v415_v6 = vadd.f32 %v411_v5, %v389_v42  ;;  %v423_v7 = vpop.permute.xlu0 %422  ;;  %v414_v8 = vadd.f32 %v410_v28, %v388_v33  ;;  %v499_v41 = vpop.permute.xlu2 %498 }
 0x14c   :  { %v419_v9 = vpop.permute.xlu1 %418 }
 0x14d   :  { %v426_v29 = vsel %vm2648_vm4, %v419_v9, %v423_v7  ;;  %v428_v19 = vsel %vm2649_vm5, %v423_v7, %v419_v9  ;;  %vm588_vm4 = vcmp.le.s32.totalorder %v1978_v53, 122  ;;  %vm619_vm5 = vcmp.lt.s32.totalorder %v1945_v40, 122 }
 0x14e   :  { %v437_v11 = vsel %vm2650_vm10, %v426_v29, 0.0  ;;  %v438_v22 = vsel %vm2651_vm11, %v428_v19, 0.0  ;;  %vm626_vm10 = vcmp.le.s32.totalorder %v1945_v40, 121  ;;  %vm627_vm11 = vcmp.le.s32.totalorder %v1978_v53, 121 }
 0x14f   :  { %v449_v1 = vmul.f32 %v1923_v32, %v437_v11  ;;  %v450_v3 = vmul.f32 %v1923_v32, %v438_v22 }
 0x151   :  { %v453_v12 = vadd.f32 %v449_v1, %v414_v8  ;;  %v454_v13 = vadd.f32 %v450_v3, %v415_v6  ;;  %1708 = vset.pattern.permute.xlu2 %v1728_v10 }
 0x152   :  { %1707 = vset.pattern.permute.xlu1 %v1728_v10 }
 0x153   :  { %735 = vperm.xlu1 %1707, %v25_v37   ;;  %v462_v30 = vpop.permute.xlu0 %461  ;;  %v523_v10 = vpop.permute.xlu2 %522 }
 0x154   :  { %v458_v14 = vpop.permute.xlu1 %457 }
 0x155   :  { %v465_v32 = vsel %vm2652_vm14, %v458_v14, %v462_v30  ;;  %v467_v15 = vsel %vm2653_vm15, %v462_v30, %v458_v14  ;;  %vm666_vm14 = vcmp.le.s32.totalorder %v1978_v53, 120  ;;  %vm697_vm15 = vcmp.lt.s32.totalorder %v1945_v40, 120 }
 0x156   :  { %v476_v18 = vsel %vm470_vm12, %v465_v32, 0.0  ;;  %v477_v31 = vsel %vm471_vm13, %v467_v15, 0.0  ;;  %vm658_vm12 = vcmp.lt.s32.totalorder %v1945_v40, 121  ;;  %vm665_vm13 = vcmp.le.s32.totalorder %v1945_v40, 120 }
 0x157   :  { %v488_v23 = vmul.f32 %v484_v2, %v476_v18  ;;  %v489_v26 = vmul.f32 %v484_v2, %v477_v31 }
 0x159   :  { %v492_v35 = vadd.f32 %v488_v23, %v453_v12  ;;  %v493_v21 = vadd.f32 %v489_v26, %v454_v13 }
 0x15b   :  { %v495_v16 = vpop.permute.xlu0 %494  ;;  %v538_v55 = vpop.permute.xlu2 %537 }
 0x15c   :  { %v480_v38 = vpop.permute.xlu1 %479  ;;  %v503_v39 = vsel %vm502_vm0, %v495_v16, %v499_v41  ;;  %v505_v43 = vsel %vm502_vm0, %v499_v41, %v495_v16 }
 0x15d   :  { %v486_v44 = vmul.f32 %v480_v38, %v474_v57  ;;  %v487_v47 = vmul.f32 %v480_v38, %v475_v34  ;;  %v513_v60 = vsel %vm509_vm1, %v503_v39, 0.0  ;;  %v514_v61 = vsel %vm510_vm6, %v505_v43, 0.0  ;;  %v1634_v34 = vld [vmem:[%s2627_s3 + $0x30] sm:$0xff]  ;;  %v1633_v39 = vld [vmem:[%s2627_s3 + $0x28] sm:$0xff] }
 0x15e   :  { %v1642_v38 = vld [vmem:[%s2627_s3 + $0x70] sm:$0xff]  ;;  %v1641_v43 = vld [vmem:[%s2627_s3 + $0x68] sm:$0xff] }
 0x15f   :  { %v490_v45 = vadd.f32 %v486_v44, %v2121_v50  ;;  %v491_v51 = vadd.f32 %v487_v47, %v2123_v46 }
 0x163   :  { %v501_v52 = vpop.permute.xlu0 %500  ;;  %v562_v63 = vpop.permute.xlu2 %561 }
 0x164   :  { %v497_v54 = vpop.permute.xlu1 %496 }
 0x165   :  { %v504_v36 = vsel %vm502_vm0, %v497_v54, %v501_v52  ;;  %v506_v49 = vsel %vm502_vm0, %v501_v52, %v497_v54  ;;  %v1640_v52 = vld [vmem:[%s2627_s3 + $0x60] sm:$0xff]  ;;  %v1631_v54 = vld [vmem:[%s2627_s3 + $0x18] sm:$0xff]  ;;  %vm704_vm0 = vcmp.le.s32.totalorder %v1945_v40, 119 }
 0x166   :  { %v515_v25 = vsel %vm509_vm1, %v504_v36, 0.0  ;;  %v516_v56 = vsel %vm510_vm6, %v506_v49, 0.0  ;;  %vm705_vm1 = vcmp.le.s32.totalorder %v1978_v53, 119 }
 0x167   :  { %v527_v58 = vmul.f32 %v523_v10, %v515_v25  ;;  %v528_v48 = vmul.f32 %v523_v10, %v516_v56  ;;  %v1643_v10 = vld [vmem:[%s2627_s3 + $0x78] sm:$0xff]  ;;  %v1630_v56 = vld [vmem:[%s2627_s3 + $0x10] sm:$0xff] }
 0x168   :  { %910 = vmatpush.bf16.msra.mxu3 %v1643_v10 }
 0x169   :  { %v531_v50 = vadd.f32 %v527_v58, %v492_v35  ;;  %v532_v24 = vadd.f32 %v528_v48, %v493_v21  ;;  %v1635_v21 = vld [vmem:[%s2627_s3 + $0x38] sm:$0xff]  ;;  %v1638_v58 = vld [vmem:[%s2627_s3 + $0x50] sm:$0xff] }
 0x16a   :  { %896 = vmatpush.bf16.msra.mxu2 %v1635_v21 }
 0x16b   :  { %v534_v46 = vpop.permute.xlu0 %533  ;;  %v577_v7 = vpop.permute.xlu2 %576 }
 0x16c   :  { %v519_v59 = vpop.permute.xlu1 %518  ;;  %v542_v8 = vsel %vm541_vm7, %v534_v46, %v538_v55  ;;  %v544_v9 = vsel %vm541_vm7, %v538_v55, %v534_v46  ;;  %911 = vmatpush.bf16.msra.mxu3 %v1642_v38  ;;  %v1639_v55 = vld [vmem:[%s2627_s3 + $0x58] sm:$0xff]  ;;  %v1629_v46 = vld [vmem:[%s2627_s3 + $0x8] sm:$0xff] }
 0x16d   :  { %v525_v17 = vmul.f32 %v519_v59, %v513_v60  ;;  %v526_v62 = vmul.f32 %v519_v59, %v514_v61  ;;  %v552_v1 = vsel %vm548_vm8, %v542_v8, 0.0  ;;  %v553_v3 = vsel %vm549_vm3, %v544_v9, 0.0  ;;  %v1637_v59 = vld [vmem:[%s2627_s3 + $0x48] sm:$0xff] }
 0x16e   :  { %897 = vmatpush.bf16.msra.mxu2 %v1634_v34 }
 0x16f   :  { %v529_v27 = vadd.f32 %v525_v17, %v490_v45  ;;  %v530_v0 = vadd.f32 %v526_v62, %v491_v51  ;;  %v1632_v51 = vld [vmem:[%s2627_s3 + $0x20] sm:$0xff] }
 0x170   :  { %912 = vmatpush.bf16.msra.mxu3 %v1641_v43 }
 0x172   :  { %898 = vmatpush.bf16.msra.mxu2 %v1633_v39 }
 0x173   :  { %v540_v2 = vpop.permute.xlu0 %539  ;;  %v2271_v30 = vpop.permute.xlu2 %600 }
 0x174   :  { %v536_v20 = vpop.permute.xlu1 %535  ;;  %913 = vmatpush.bf16.msra.mxu3 %v1640_v52 }
 0x175   :  { %v543_v4 = vsel %vm541_vm7, %v536_v20, %v540_v2  ;;  %v545_v5 = vsel %vm541_vm7, %v540_v2, %v536_v20 }
 0x176   :  { %v554_v33 = vsel %vm548_vm8, %v543_v4, 0.0  ;;  %v555_v42 = vsel %vm549_vm3, %v545_v5, 0.0  ;;  %899 = vmatpush.bf16.msra.mxu2 %v1632_v51  ;;  %v1628_v4 = vld [vmem:[%s2627_s3] sm:$0xff] }
 0x177   :  { %v566_v28 = vmul.f32 %v562_v63, %v554_v33  ;;  %v567_v6 = vmul.f32 %v562_v63, %v555_v42  ;;  %v1636_v5 = vld [vmem:[%s2627_s3 + $0x40] sm:$0xff] }
 0x178   :  { %914 = vmatpush.bf16.msra.mxu3 %v1639_v55 }
 0x179   :  { %v2263_v29 = vadd.f32 %v566_v28, %v531_v50  ;;  %v2265_v19 = vadd.f32 %v567_v6, %v532_v24 }
 0x17a   :  { %900 = vmatpush.bf16.msra.mxu2 %v1631_v54 }
 0x17b   :  { %v573_v11 = vpop.permute.xlu0 %572  ;;  %v616_v31 = vpop.permute.xlu2 %615 }
 0x17c   :  { %v558_v22 = vpop.permute.xlu1 %557  ;;  %v581_v48 = vsel %vm580_vm9, %v573_v11, %v577_v7  ;;  %v583_v24 = vsel %vm580_vm9, %v577_v7, %v573_v11  ;;  %915 = vmatpush.bf16.msra.mxu3 %v1638_v58 }
 0x17d   :  { %v564_v37 = vmul.f32 %v558_v22, %v552_v1  ;;  %v565_v41 = vmul.f32 %v558_v22, %v553_v3  ;;  %v591_v17 = vsel %vm587_vm2, %v581_v48, 0.0  ;;  %v592_v62 = vsel %vm588_vm4, %v583_v24, 0.0 }
 0x17e   :  { %901 = vmatpush.bf16.msra.mxu2 %v1630_v56 }
 0x17f   :  { %v2267_v12 = vadd.f32 %v564_v37, %v529_v27  ;;  %v2269_v13 = vadd.f32 %v565_v41, %v530_v0 }
 0x180   :  { %916 = vmatpush.bf16.msra.mxu3 %v1637_v59 }
 0x182   :  { %902 = vmatpush.bf16.msra.mxu2 %v1629_v46 }
 0x183   :  { %v579_v14 = vpop.permute.xlu0 %578  ;;  %v2277_v35 = vpop.permute.xlu2 %639 }
 0x184   :  { %v575_v32 = vpop.permute.xlu1 %574  ;;  %917 = vmatpush.bf16.msra.mxu3 %v1636_v5 }
 0x185   :  { %v582_v50 = vsel %vm580_vm9, %v575_v32, %v579_v14  ;;  %v584_v60 = vsel %vm580_vm9, %v579_v14, %v575_v32  ;;  %vm925_vm9 = vcmp.lt.s32.totalorder %v1945_v40, 64 }
 0x186   :  { %v593_v61 = vsel %vm587_vm2, %v582_v50, 0.0  ;;  %v594_v27 = vsel %vm588_vm4, %v584_v60, 0.0  ;;  %903 = vmatpush.bf16.msra.mxu2 %v1628_v4 }
 0x187   :  { %v605_v33 = vmul.f32 %v2271_v30, %v593_v61  ;;  %v606_v9 = vmul.f32 %v2271_v30, %v594_v27 }
 0x189   :  { %v609_v48 = vadd.f32 %v605_v33, %v2263_v29  ;;  %v610_v50 = vadd.f32 %v606_v9, %v2265_v19 }
 0x18b   :  { %v612_v15 = vpop.permute.xlu0 %611  ;;  %v655_v44 = vpop.permute.xlu2 %654 }
 0x18c   :  { %v597_v18 = vpop.permute.xlu1 %596  ;;  %v620_v2 = vsel %vm619_vm5, %v612_v15, %v616_v31  ;;  %v622_v20 = vsel %vm619_vm5, %v616_v31, %v612_v15 }
 0x18d   :  { %v603_v63 = vmul.f32 %v597_v18, %v591_v17  ;;  %v604_v0 = vmul.f32 %v597_v18, %v592_v62  ;;  %v630_v22 = vsel %vm626_vm10, %v620_v2, 0.0  ;;  %v631_v1 = vsel %vm627_vm11, %v622_v20, 0.0 }
 0x18f   :  { %v607_v11 = vadd.f32 %v603_v63, %v2267_v12  ;;  %v608_v37 = vadd.f32 %v604_v0, %v2269_v13 }
 0x193   :  { %v2273_v23 = vpop.permute.xlu0 %617  ;;  %v2316_v36 = vpop.permute.xlu2 %678 }
 0x194   :  { %v2275_v26 = vpop.permute.xlu1 %613 }
 0x195   :  { %v621_v42 = vsel %vm619_vm5, %v2275_v26, %v2273_v23  ;;  %v623_v28 = vsel %vm619_vm5, %v2273_v23, %v2275_v26 }
 0x196   :  { %v632_v12 = vsel %vm626_vm10, %v621_v42, 0.0  ;;  %v633_v30 = vsel %vm627_vm11, %v623_v28, 0.0 }
 0x197   :  { %v644_v39 = vmul.f32 %v2277_v35, %v632_v12  ;;  %v645_v43 = vmul.f32 %v2277_v35, %v633_v30 }
 0x199   :  { %v648_v61 = vadd.f32 %v644_v39, %v609_v48  ;;  %v649_v17 = vadd.f32 %v645_v43, %v610_v50  ;;  %v40_v39 = vld [vmem:[%s2625_s1 + $0xa0] sm:$0xff]  ;;  %v27_v43 = vld [vmem:[%s2625_s1 + $0x38] sm:$0xff] }
 0x19b   :  { %v651_v16 = vpop.permute.xlu0 %650  ;;  %v694_v3 = vpop.permute.xlu2 %693 }
 0x19c   :  { %v2285_v57 = vpop.permute.xlu1 %635  ;;  %v659_v6 = vsel %vm658_vm12, %v651_v16, %v655_v44  ;;  %v661_v7 = vsel %vm658_vm12, %v655_v44, %v651_v16 }
 0x19d   :  { %v642_v41 = vmul.f32 %v2285_v57, %v630_v22  ;;  %v643_v14 = vmul.f32 %v2285_v57, %v631_v1  ;;  %v669_v15 = vsel %vm665_vm13, %v659_v6, 0.0  ;;  %v670_v13 = vsel %vm666_vm14, %v661_v7, 0.0 }
 0x19f   :  { %v646_v16 = vadd.f32 %v642_v41, %v607_v11  ;;  %v647_v57 = vadd.f32 %v643_v14, %v608_v37 }
 0x1a3   :  { %v2299_v47 = vpop.permute.xlu0 %656 }
 0x1a4   :  { %v2301_v45 = vpop.permute.xlu1 %652 }
 0x1a5   :  { %v660_v18 = vsel %vm658_vm12, %v2301_v45, %v2299_v47  ;;  %v662_v31 = vsel %vm658_vm12, %v2299_v47, %v2301_v45 }
 0x1a6   :  { %v671_v44 = vsel %vm665_vm13, %v660_v18, 0.0  ;;  %v672_v47 = vsel %vm666_vm14, %v662_v31, 0.0 }
 0x1a7   :  { %v683_v24 = vmul.f32 %v2316_v36, %v671_v44  ;;  %v684_v46 = vmul.f32 %v2316_v36, %v672_v47  ;;  %v41_v44 = vld [vmem:[%s2625_s1 + $0xa8] sm:$0xff] }
 0x1a9   :  { %v687_v2 = vadd.f32 %v683_v24, %v648_v61  ;;  %v688_v20 = vadd.f32 %v684_v46, %v649_v17 }
 0x1ab   :  { %v690_v25 = vpop.permute.xlu0 %689 }
 0x1ac   :  { %v675_v49 = vpop.permute.xlu1 %674  ;;  %v698_v21 = vsel %vm697_vm15, %v690_v25, %v694_v3  ;;  %v700_v10 = vsel %vm697_vm15, %v694_v3, %v690_v25 }
 0x1ad   :  { %v681_v23 = vmul.f32 %v675_v49, %v669_v15  ;;  %v682_v26 = vmul.f32 %v675_v49, %v670_v13  ;;  %v708_v54 = vsel %vm704_vm0, %v698_v21, 0.0  ;;  %v709_v55 = vsel %vm705_vm1, %v700_v10, 0.0  ;;  %v718_v49 = vpop.permute.xlu2 %717 }
 0x1af   :  { %v685_v45 = vadd.f32 %v681_v23, %v646_v16  ;;  %v686_v51 = vadd.f32 %v682_v26, %v647_v57 }
 0x1b3   :  { %v696_v32 = vpop.permute.xlu0 %695 }
 0x1b4   :  { %v692_v8 = vpop.permute.xlu1 %691 }
 0x1b5   :  { %v699_v34 = vsel %vm697_vm15, %v692_v8, %v696_v32  ;;  %v701_v38 = vsel %vm697_vm15, %v696_v32, %v692_v8 }
 0x1b6   :  { %v710_v25 = vsel %vm704_vm0, %v699_v34, 0.0  ;;  %v711_v35 = vsel %vm705_vm1, %v701_v38, 0.0  ;;  %v26_v38 = vld [vmem:[%s2625_s1 + $0x30] sm:$0xff] }
 0x1b7   :  { %v722_v62 = vmul.f32 %v718_v49, %v710_v25  ;;  %v723_v63 = vmul.f32 %v718_v49, %v711_v35 }
 0x1b9   :  { %v726_v29 = vadd.f32 %v722_v62, %v687_v2  ;;  %v727_v33 = vadd.f32 %v723_v63, %v688_v20 }
 0x1bb   :  { %v731_v27 = vpop.permute.xlu0 %730 }
 0x1bc   :  { %v714_v52 = vpop.permute.xlu1 %713 }
 0x1bd   :  { %v720_v56 = vmul.f32 %v714_v52, %v708_v54  ;;  %v721_v58 = vmul.f32 %v714_v52, %v709_v55  ;;  %v2471_v55 = vand.u32 31, %v1945_v40  ;;  %v1161_v40 = vld [vmem:[%s2629_s4 + $0x38] sm:$0xff] }
 0x1be   :  { %1177 = vmatpush.msrb.mxu2 %v1161_v40 }
 0x1bf   :  { %v724_v59 = vadd.f32 %v720_v56, %v685_v45  ;;  %v725_v60 = vadd.f32 %v721_v58, %v686_v51  ;;  %vm1077_vm2 = vcmp.le.s32.totalorder %v2471_v55, 23  ;;  %vm990_vm5 = vcmp.ge.s32.totalorder %v2471_v55, 1 }
 0x1c0   :  { %vm1079_vm4 = vmand %vm1077_vm2, %vm925_vm9  ;;  %vm980_vm11 = vcmp.ge.s32.totalorder %v2471_v55, 2  ;;  %vm970_vm13 = vcmp.ge.s32.totalorder %v2471_v55, 3  ;;  %vm1067_vm14 = vcmp.le.s32.totalorder %v2471_v55, 24  ;;  %vm1057_vm1 = vcmp.le.s32.totalorder %v2471_v55, 25 }
 0x1c1   :  { %v738_v0 = vadd.f32 %v731_v27, %v724_v59  ;;  %v739_v53 = vadd.f32 %v731_v27, %v725_v60  ;;  %vm993_vm10 = vmand %vm990_vm5, %vm925_vm9 }
 0x1c2   :  { %vm983_vm12 = vmand %vm980_vm11, %vm925_vm9  ;;  %vm1037_vm11 = vcmp.le.s32.totalorder %v2471_v55, 27 }
 0x1c3   :  { %v746_v4 = vmin.f32 %v738_v0, 0.0  ;;  %v747_v5 = vmin.f32 %v739_v53, 0.0  ;;  %vm742_vm6 = vcmp.gt.f32.partialorder %v738_v0, 0.0  ;;  %vm743_vm8 = vcmp.gt.f32.partialorder %v739_v53, 0.0  ;;  %vm973_vm15 = vmand %vm970_vm13, %vm925_vm9 }
 0x1c4   :  { %vm1069_vm0 = vmand %vm1067_vm14, %vm925_vm9  ;;  %vm1027_vm14 = vcmp.le.s32.totalorder %v2471_v55, 28 }
 0x1c5   :  { %v750_v19 = vmul.f32 1.442695, %v746_v4  ;;  %v752_v42 = vmul.f32 1.442695, %v747_v5  ;;  %v736_v28 = vpop.permute.xlu1 %735  ;;  %vm1039_vm13 = vmand %vm1037_vm11, %vm925_vm9  ;;  %vm1352_vm11 = vcmask 195584  }
 0x1c6   :  { %v740_v6 = vadd.f32 %v736_v28, %v726_v29  ;;  %v741_v36 = vadd.f32 %v736_v28, %v727_v33  ;;  %v1082_v29 = vld [vmem:[%s2628_s2] sm:$0xff]  ;;  %v1083_v28 = vld [vmem:[%s2628_s2 + $0x8] sm:$0xff] }
 0x1c7   :  { %1709 = vpow2.f32 %v750_v19 }
 0x1c8   :  { %v748_v7 = vmin.f32 %v740_v6, 0.0  ;;  %v749_v8 = vmin.f32 %v741_v36, 0.0  ;;  %1711 = vpow2.f32 %v752_v42  ;;  %vm744_vm7 = vcmp.gt.f32.partialorder %v740_v6, 0.0  ;;  %v1084_v42 = vld [vmem:[%s2628_s2 + $0x10] sm:$0xff] }
 0x1c9   :  { %vm745_vm3 = vcmp.gt.f32.partialorder %v741_v36, 0.0 }
 0x1ca   :  { %v754_v9 = vmul.f32 1.442695, %v748_v7  ;;  %v756_v11 = vmul.f32 1.442695, %v749_v8  ;;  %v1160_v7 = vld [vmem:[%s2629_s4 + $0x30] sm:$0xff]  ;;  %v1159_v8 = vld [vmem:[%s2629_s4 + $0x28] sm:$0xff] }
 0x1cb   :  { %1178 = vmatpush.msrb.mxu2 %v1160_v7 }
 0x1cc   :  { %1713 = vpow2.f32 %v754_v9  ;;  %v1158_v9 = vld [vmem:[%s2629_s4 + $0x20] sm:$0xff] }
 0x1cd   :  { %1715 = vpow2.f32 %v756_v11  ;;  %v1710_v22 = vpop.eup %1709  ;;  %1179 = vmatpush.msrb.mxu2 %v1159_v8  ;;  %v1157_v11 = vld [vmem:[%s2629_s4 + $0x18] sm:$0xff]  ;;  %v44_v8 = vld [vmem:[%s2625_s1 + $0xc0] sm:$0xff] }
 0x1ce   :  { %v1712_v1 = vpop.eup %1711  ;;  %v1510_v3 = vadd.f32 -1.0, %v1710_v22  ;;  %v1156_v22 = vld [vmem:[%s2629_s4 + $0x10] sm:$0xff] }
 0x1cf   :  { %v1511_v41 = vadd.f32 -1.0, %v1712_v1  ;;  %1180 = vmatpush.msrb.mxu2 %v1158_v9  ;;  %v1155_v1 = vld [vmem:[%s2629_s4 + $0x8] sm:$0xff] }
 0x1d0   :  { %v762_v30 = vsel %vm742_vm6, %v738_v0, %v1510_v3  ;;  %vm1059_vm6 = vmand %vm1057_vm1, %vm925_vm9  ;;  %vm1017_vm1 = vcmp.le.s32.totalorder %v2471_v55, 29  ;;  %v1154_v3 = vld [vmem:[%s2629_s4] sm:$0xff]  ;;  %v45_v9 = vld [vmem:[%s2625_s1 + $0xc8] sm:$0xff] }
 0x1d1   :  { %v763_v18 = vsel %vm743_vm8, %v739_v53, %v1511_v41  ;;  %vm1047_vm8 = vcmp.le.s32.totalorder %v2471_v55, 26  ;;  %1181 = vmatpush.msrb.mxu2 %v1157_v11  ;;  %v29_v41 = vld [vmem:[%s2625_s1 + $0x48] sm:$0xff] }
 0x1d2   :  { %v1714_v37 = vpop.eup %1713  ;;  %vm1049_vm2 = vmand %vm1047_vm8, %vm925_vm9  ;;  %vm1007_vm8 = vcmp.le.s32.totalorder %v2471_v55, 30  ;;  %1213 = vmatpush.msrb.mxu3 %v29_v41 }
 0x1d3   :  { %v1716_v14 = vpop.eup %1715  ;;  %v1512_v32 = vadd.f32 -1.0, %v1714_v37  ;;  %1182 = vmatpush.msrb.mxu2 %v1156_v22  ;;  %v31_v37 = vld [vmem:[%s2625_s1 + $0x58] sm:$0xff] }
 0x1d4   :  { %v1513_v12 = vadd.f32 -1.0, %v1716_v14 }
 0x1d5   :  { %v764_v15 = vsel %vm744_vm7, %v740_v6, %v1512_v32  ;;  %vm960_vm7 = vcmp.ge.s32.totalorder %v2471_v55, 4  ;;  %1183 = vmatpush.msrb.mxu2 %v1155_v1 }
 0x1d6   :  { %v766_v13 = vpack.c.bf16 %v764_v15, %v762_v30  ;;  %v765_v31 = vsel %vm745_vm3, %v741_v36, %v1513_v12  ;;  %vm963_vm3 = vmand %vm960_vm7, %vm925_vm9  ;;  %v1085_v36 = vld [vmem:[%s2628_s2 + $0x18] sm:$0xff] }
 0x1d7   :  { %v767_v23 = vpack.c.bf16 %v765_v31, %v763_v18  ;;  %vm1019_vm7 = vmand %vm1017_vm1, %vm925_vm9  ;;  %1184 = vmatpush.msrb.mxu2 %v1154_v3 }
 0x1d8   :  { %904 = vmatmul.bf16.vlgmr.msra.gmra.mxu2 %v766_v13 }
 0x1d9   :  { %918 = vmatmul.bf16.vlgmr.msra.gmra.mxu3 %v767_v23 }
 0x25b   :  { %v905_v26 = vpop.f32.mrf.mxu2 }
 0x25c   :  { %v919_v21 = vpop.f32.mrf.mxu3 }
 0x25d   :  { %v920_v10 = vadd.f32 %v919_v21, %v905_v26 }
 0x25f   :  { %976 = vrot.lane.b32.xlu1 %v920_v10, %s1739_s7  ;;  %986 = vrot.lane.b32.xlu0 %v920_v10, %s1740_s8 }
 0x260   :  { %1072 = vrot.lane.b32.xlu2 %v920_v10, %s1754_s16 }
 0x263   :  { %v907_v16 = vpop.f32.mrf.mxu2 }
 0x264   :  { %v921_v57 = vpop.f32.mrf.mxu3 }
 0x265   :  { %v922_v34 = vadd.f32 %v921_v57, %v907_v16 }
 0x267   :  { %1052 = vrot.lane.b32.xlu1 %v920_v10, %s1750_s14  ;;  %1062 = vrot.lane.b32.xlu0 %v920_v10, %s1752_s15 }
 0x268   :  { %966 = vrot.lane.b32.xlu2 %v920_v10, %s1736_s29  ;;  %1578 = vmatpush.msk.msrb.mxu0 %vm925_vm9, %v922_v34 }
 0x26a   :  { %1579 = vmatpush.msk.msrb.mxu0 %vm925_vm9, %v920_v10 }
 0x26f   :  { %946 = vrot.lane.b32.xlu1 %v920_v10, %s1737_s30  ;;  %956 = vrot.lane.b32.xlu0 %v920_v10, %s1738_s6 }
 0x270   :  { %1042 = vrot.lane.b32.xlu2 %v920_v10, %s1748_s13 }
 0x277   :  { %1022 = vrot.lane.b32.xlu1 %v920_v10, %s1744_s11  ;;  %1032 = vrot.lane.b32.xlu0 %v920_v10, %s1746_s12 }
 0x278   :  { %936 = vrot.lane.b32.xlu2 %v920_v10, %s1734_s27 }
 0x27f   :  { %968 = vrot.lane.b32.xlu0 %v922_v34, %s1736_s29  ;;  %988 = vrot.lane.b32.xlu1 %v922_v34, %s1740_s8 }
 0x280   :  { %1074 = vrot.lane.b32.xlu2 %v922_v34, %s1754_s16 }
 0x287   :  { %1044 = vrot.lane.b32.xlu0 %v922_v34, %s1748_s13  ;;  %1064 = vrot.lane.b32.xlu1 %v922_v34, %s1752_s15 }
 0x288   :  { %978 = vrot.lane.b32.xlu2 %v922_v34, %s1739_s7 }
 0x28f   :  { %938 = vrot.lane.b32.xlu0 %v922_v34, %s1734_s27  ;;  %958 = vrot.lane.b32.xlu1 %v922_v34, %s1738_s6 }
 0x290   :  { %1054 = vrot.lane.b32.xlu2 %v922_v34, %s1750_s14 }
 0x297   :  { %1014 = vrot.lane.b32.xlu0 %v922_v34, %s1742_s10  ;;  %1034 = vrot.lane.b32.xlu1 %v922_v34, %s1746_s12 }
 0x298   :  { %948 = vrot.lane.b32.xlu2 %v922_v34, %s1737_s30 }
 0x29f   :  { %926 = vrot.lane.b32.xlu0 %v920_v10, %s1735_s28  ;;  %928 = vrot.lane.b32.xlu1 %v922_v34, %s1735_s28 }
 0x2a0   :  { %1024 = vrot.lane.b32.xlu2 %v922_v34, %s1744_s11 }
 0x2a7   :  { %1088 = vperm.xlu0 %1689, %v26_v38   ;;  %1004 = vrot.lane.b32.xlu1 %v922_v34, %s1741_s9 }
 0x2a8   :  { %1012 = vrot.lane.b32.xlu2 %v920_v10, %s1742_s10 }
 0x2af   :  { %1276 = vperm.xlu0 %1689, %v40_v39   ;;  %1093 = vperm.xlu1 %1707, %v27_v43  }
 0x2b0   :  { %1002 = vrot.lane.b32.xlu2 %v920_v10, %s1741_s9 }
 0x2b7   :  { %1349 = vperm.xlu1 %1707, %v41_v44  }
 0x2ba   :  { %v1073_v47 = vpop.permute.xlu2 %1072 }
 0x2c2   :  { %v967_v45 = vpop.permute.xlu2 %966 }
 0x2ca   :  { %v1043_v51 = vpop.permute.xlu2 %1042 }
 0x2d1   :  { %v977_v52 = vpop.permute.xlu1 %976  ;;  %v987_v54 = vpop.permute.xlu0 %986 }
 0x2d2   :  { %v2473_v49 = vpop.permute.xlu2 %936 }
 0x2d9   :  { %v1053_v25 = vpop.permute.xlu1 %1052  ;;  %v1063_v35 = vpop.permute.xlu0 %1062 }
 0x2da   :  { %v1075_v56 = vpop.permute.xlu2 %1074 }
 0x2db   :  { %1594 = vmatpush.msk.msrb.mxu1 %vm1079_vm4, %v1075_v56 }
 0x2dd   :  { %1595 = vmatpush.msk.msrb.mxu1 %vm1079_vm4, %v1073_v47  ;;  %vm950_vm4 = vcmp.ge.s32.totalorder %v2471_v55, 5 }
 0x2de   :  { %vm953_vm5 = vmand %vm950_vm4, %vm925_vm9 }
 0x2e1   :  { %v947_v58 = vpop.permute.xlu1 %946  ;;  %v957_v48 = vpop.permute.xlu0 %956 }
 0x2e2   :  { %v979_v50 = vpop.permute.xlu2 %978 }
 0x2e9   :  { %v1023_v24 = vpop.permute.xlu1 %1022  ;;  %v1033_v46 = vpop.permute.xlu0 %1032 }
 0x2ea   :  { %v1055_v61 = vpop.permute.xlu2 %1054 }
 0x2f1   :  { %v969_v59 = vpop.permute.xlu0 %968  ;;  %v989_v60 = vpop.permute.xlu1 %988 }
 0x2f2   :  { %1580 = vmatpush.msk.msrb.mxu0 %vm993_vm10, %v989_v60  ;;  %v949_v63 = vpop.permute.xlu2 %948  ;;  %v33_v60 = vld [vmem:[%s2625_s1 + $0x68] sm:$0xff] }
 0x2f3   :  { %1321 = vmatpush.msra.mxu2 %v33_v60 }
 0x2f4   :  { %1581 = vmatpush.msk.msrb.mxu0 %vm993_vm10, %v987_v54  ;;  %vm940_vm10 = vcmp.ge.s32.totalorder %v2471_v55, 6 }
 0x2f6   :  { %1582 = vmatpush.msk.msrb.mxu0 %vm983_vm12, %v979_v50  ;;  %v43_v50 = vld [vmem:[%s2625_s1 + $0xb8] sm:$0xff] }
 0x2f8   :  { %1583 = vmatpush.msk.msrb.mxu0 %vm983_vm12, %v977_v52  ;;  %vm943_vm12 = vmand %vm940_vm10, %vm925_vm9  ;;  %vm1250_vm10 = vcmask 392192  }
 0x2f9   :  { %v1045_v17 = vpop.permute.xlu0 %1044  ;;  %v1065_v62 = vpop.permute.xlu1 %1064 }
 0x2fa   :  { %1584 = vmatpush.msk.msrb.mxu0 %vm973_vm15, %v969_v59  ;;  %1596 = vmatpush.msk.msrb.mxu1 %vm1069_vm0, %v1065_v62  ;;  %v1025_v53 = vpop.permute.xlu2 %1024  ;;  %v35_v59 = vld [vmem:[%s2625_s1 + $0x78] sm:$0xff] }
 0x2fc   :  { %1585 = vmatpush.msk.msrb.mxu0 %vm973_vm15, %v967_v45  ;;  %1597 = vmatpush.msk.msrb.mxu1 %vm1069_vm0, %v1063_v35  ;;  %vm1029_vm15 = vmand %vm1027_vm14, %vm925_vm9  ;;  %vm930_vm0 = vcmp.ge.s32.totalorder %v2471_v55, 7  ;;  %v28_v45 = vld [vmem:[%s2625_s1 + $0x40] sm:$0xff]  ;;  %v39_v35 = vld [vmem:[%s2625_s1 + $0x98] sm:$0xff] }
 0x2fd   :  { %1214 = vmatpush.msrb.mxu3 %v28_v45  ;;  %1247 = vperm.xlu2 %1708, %v39_v35  }
 0x2fe   :  { %1598 = vmatpush.msk.msrb.mxu1 %vm1059_vm6, %v1055_v61  ;;  %v32_v61 = vld [vmem:[%s2625_s1 + $0x60] sm:$0xff] }
 0x2ff   :  { %1341 = vmatpush.msra.mxu3 %v35_v59  ;;  %1322 = vmatpush.msra.mxu2 %v32_v61 }
 0x300   :  { %1599 = vmatpush.msk.msrb.mxu1 %vm1059_vm6, %v1053_v25  ;;  %vm933_vm6 = vmand %vm930_vm0, %vm925_vm9 }
 0x301   :  { %v939_v27 = vpop.permute.xlu0 %938  ;;  %v959_v0 = vpop.permute.xlu1 %958 }
 0x302   :  { %1586 = vmatpush.msk.msrb.mxu0 %vm963_vm3, %v959_v0  ;;  %1600 = vmatpush.msk.msrb.mxu1 %vm1049_vm2, %v1045_v17  ;;  %v1013_v4 = vpop.permute.xlu2 %1012  ;;  %v34_v17 = vld [vmem:[%s2625_s1 + $0x70] sm:$0xff] }
 0x303   :  { %1342 = vmatpush.msra.mxu3 %v34_v17 }
 0x304   :  { %1587 = vmatpush.msk.msrb.mxu0 %vm963_vm3, %v957_v48  ;;  %1601 = vmatpush.msk.msrb.mxu1 %vm1049_vm2, %v1043_v51  ;;  %vm1009_vm3 = vmand %vm1007_vm8, %vm925_vm9  ;;  %vm1162_vm9 = vcmask 523264   ;;  %v30_v51 = vld [vmem:[%s2625_s1 + $0x50] sm:$0xff] }
 0x305   :  { %v46_v48 = vld [vmem:[%s2625_s1 + $0xd0] sm:$0xff] }
 0x306   :  { %1588 = vmatpush.msk.msrb.mxu0 %vm953_vm5, %v949_v63  ;;  %1473 = vperm.xlu2 %1708, %v46_v48  }
 0x308   :  { %1589 = vmatpush.msk.msrb.mxu0 %vm953_vm5, %v947_v58  ;;  %vm1192_vm5 = vcmask 130048   ;;  %v36_v58 = vld [vmem:[%s2625_s1 + $0x80] sm:$0xff] }
 0x309   :  { %v1015_v2 = vpop.permute.xlu0 %1014  ;;  %v1035_v20 = vpop.permute.xlu1 %1034 }
 0x30a   :  { %1590 = vmatpush.msk.msrb.mxu0 %vm943_vm12, %v939_v27  ;;  %1602 = vmatpush.msk.msrb.mxu1 %vm1039_vm13, %v1035_v20  ;;  %v1003_v6 = vpop.permute.xlu2 %1002 }
 0x30c   :  { %1591 = vmatpush.msk.msrb.mxu0 %vm943_vm12, %v2473_v49  ;;  %1603 = vmatpush.msk.msrb.mxu1 %vm1039_vm13, %v1033_v46  ;;  %v38_v46 = vld [vmem:[%s2625_s1 + $0x90] sm:$0xff]  ;;  %vm1424_vm12 = vcmask 64512   ;;  %vm1477_vm13 = vcmask 11264  }
 0x30e   :  { %1604 = vmatpush.msk.msrb.mxu1 %vm1029_vm15, %v1025_v53 }
 0x310   :  { %1605 = vmatpush.msk.msrb.mxu1 %vm1029_vm15, %v1023_v24  ;;  %v42_v24 = vld [vmem:[%s2625_s1 + $0xb0] sm:$0xff] }
 0x311   :  { %v929_v5 = vpop.permute.xlu1 %928  ;;  %v927_v33 = vpop.permute.xlu0 %926 }
 0x312   :  { %1592 = vmatpush.msk.msrb.mxu0 %vm933_vm6, %v929_v5  ;;  %1606 = vmatpush.msk.msrb.mxu1 %vm1019_vm7, %v1015_v2 }
 0x314   :  { %1593 = vmatpush.msk.msrb.mxu0 %vm933_vm6, %v927_v33  ;;  %1607 = vmatpush.msk.msrb.mxu1 %vm1019_vm7, %v1013_v4  ;;  %v37_v33 = vld [vmem:[%s2625_s1 + $0x88] sm:$0xff] }
 0x315   :  { %1112 = vmatmul.f32.vlgmr.msrb.gmra.mxu0 %v1082_v29 }
 0x316   :  { %1236 = vmatpush.msra.mxu0 %v31_v37 }
 0x318   :  { %1237 = vmatpush.msra.mxu0 %v30_v51 }
 0x319   :  { %v1005_v19 = vpop.permute.xlu1 %1004  ;;  %v1089_v32 = vpop.permute.xlu0 %1088 }
 0x31a   :  { %1608 = vmatpush.msk.msrb.mxu1 %vm1009_vm3, %v1005_v19 }
 0x31c   :  { %1609 = vmatpush.msk.msrb.mxu1 %vm1009_vm3, %v1003_v6 }
 0x31d   :  { %1115 = vmatmul.f32.gmra.mxu0 %v1084_v42  ;;  %1135 = vmatmul.f32.vlgmr.msrb.gmra.mxu1 %v1083_v28 }
 0x321   :  { %v1094_v23 = vpop.permute.xlu1 %1093  ;;  %v1277_v0 = vpop.permute.xlu0 %1276 }
 0x325   :  { %1138 = vmatmul.f32.gmra.mxu1 %v1085_v36 }
 0x329   :  { %v1350_v28 = vpop.permute.xlu1 %1349 }
 0x357   :  { %v1248_v63 = vpop.permute.xlu2 %1247 }
 0x360   :  { %v1474_v37 = vpop.permute.xlu2 %1473 }
 0x392   :  { %v1113_v14 = vpop.f32.mrf.mxu0 }
 0x393   :  { %v1114_v12 = vadd.f32 %v1113_v14, %v1089_v32 }
 0x39a   :  { %v1136_v30 = vpop.f32.mrf.mxu1  ;;  %v1116_v18 = vpop.f32.mrf.mxu0 }
 0x39b   :  { %v1137_v15 = vadd.f32 %v1136_v30, %v1114_v12  ;;  %v1117_v26 = vadd.f32 %v1116_v18, %v1094_v23 }
 0x39d   :  { %v1144_v13 = vmin.f32 %v1137_v15, 0.0  ;;  %vm1142_vm2 = vcmp.gt.f32.partialorder %v1137_v15, 0.0 }
 0x39f   :  { %v1146_v31 = vmul.f32 1.442695, %v1144_v13 }
 0x3a1   :  { %1717 = vpow2.f32 %v1146_v31 }
 0x3a2   :  { %v1139_v21 = vpop.f32.mrf.mxu1 }
 0x3a3   :  { %v1140_v10 = vadd.f32 %v1139_v21, %v1117_v26 }
 0x3a5   :  { %v1145_v16 = vmin.f32 %v1140_v10, 0.0  ;;  %vm1143_vm4 = vcmp.gt.f32.partialorder %v1140_v10, 0.0 }
 0x3a7   :  { %v1718_v57 = vpop.eup %1717  ;;  %v1148_v34 = vmul.f32 1.442695, %v1145_v16 }
 0x3a8   :  { %v1610_v38 = vadd.f32 -1.0, %v1718_v57 }
 0x3a9   :  { %1719 = vpow2.f32 %v1148_v34 }
 0x3aa   :  { %v1152_v39 = vsel %vm1142_vm2, %v1137_v15, %v1610_v38 }
 0x3ab   :  { %1612 = vmatmul.msk.f32.vlgmr.msrb.gmra.mxu2 %vm1162_vm9, %v1152_v39 }
 0x3ac   :  { %1418 = vmatpush.msrb.mxu2 %v43_v50 }
 0x3ae   :  { %1419 = vmatpush.msrb.mxu2 %v42_v24 }
 0x3af   :  { %v1720_v43 = vpop.eup %1719 }
 0x3b0   :  { %v1611_v44 = vadd.f32 -1.0, %v1720_v43 }
 0x3b2   :  { %v1153_v47 = vsel %vm1143_vm4, %v1140_v10, %v1611_v44 }
 0x3b3   :  { %1613 = vmatmul.msk.f32.gmra.mxu2 %vm1162_vm9, %v1153_v47 }
 0x42e   :  { %v1186_v52 = vpop.f32.mrf.mxu2 }
 0x42f   :  { %1614 = vmatmul.msk.f32.vlgmr.msrb.gmra.mxu3 %vm1192_vm5, %v1186_v52  ;;  %1616 = vmatmul.msk.f32.vlgmr.msra.gmra.mxu0 %vm1192_vm5, %v1186_v52 }
 0x436   :  { %v1189_v54 = vpop.f32.mrf.mxu2 }
 0x437   :  { %1615 = vmatmul.msk.f32.gmra.mxu3 %vm1192_vm5, %v1189_v54  ;;  %1617 = vmatmul.msk.f32.gmra.mxu0 %vm1192_vm5, %v1189_v54 }
 0x4ac   :  { %v1239_v55 = vpop.f32.mrf.mxu0 }
 0x4b2   :  { %v1216_v49 = vpop.f32.mrf.mxu3 }
 0x4b4   :  { %v1242_v25 = vpop.f32.mrf.mxu0 }
 0x4b5   :  { %1264 = vmatpush.msra.mxu1 %v1242_v25 }
 0x4b7   :  { %1265 = vmatpush.msra.mxu1 %v1239_v55 }
 0x4b9   :  { %1266 = vmatpush.msra.mxu1 %v1189_v54 }
 0x4ba   :  { %v1219_v56 = vpop.f32.mrf.mxu3 }
 0x4bb   :  { %1267 = vmatpush.msra.mxu1 %v1186_v52 }
 0x4bd   :  { %1268 = vmatpush.msra.mxu1 %v1219_v56 }
 0x4bf   :  { %1269 = vmatpush.msra.mxu1 %v1216_v49 }
 0x4c0   :  { %1618 = vmatmul.msk.f32.vlgmr.msra.gmra.mxu1 %vm1250_vm10, %v36_v58 }
 0x4c1   :  { %1296 = vmatpush.msrb.mxu1 %v1189_v54 }
 0x4c3   :  { %1297 = vmatpush.msrb.mxu1 %v1186_v52 }
 0x4c5   :  { %1392 = vmatpush.msra.mxu1 %v43_v50 }
 0x4c7   :  { %1393 = vmatpush.msra.mxu1 %v42_v24 }
 0x4c8   :  { %1619 = vmatmul.msk.f32.vlgmr.msrb.gmra.mxu1 %vm1192_vm5, %v38_v46 }
 0x4d0   :  { %1623 = vmatmul.msk.f32.vlgmr.msra.gmra.mxu1 %vm1192_vm5, %v1186_v52 }
 0x4d8   :  { %1624 = vmatmul.msk.f32.gmra.mxu1 %vm1192_vm5, %v1189_v54 }
 0x53d   :  { %v1271_v62 = vpop.f32.mrf.mxu1 }
 0x53e   :  { %v1272_v27 = vadd.f32 %v1271_v62, %v1248_v63 }
 0x540   :  { %v1302_v2 = vmax.f32 %v1272_v27, 0.0 }
 0x545   :  { %v1299_v53 = vpop.f32.mrf.mxu1 }
 0x546   :  { %v1300_v20 = vadd.f32 %v1299_v53, %v1277_v0 }
 0x548   :  { %v1303_v4 = vadd.f32 %v1302_v2, %v1300_v20 }
 0x54a   :  { %1620 = vmatmul.msk.f32.vlgmr.msra.gmra.mxu2 %vm1192_vm5, %v1303_v4  ;;  %1621 = vmatmul.msk.f32.vlgmr.msra.gmra.mxu3 %vm1192_vm5, %v1303_v4 }
 0x54d   :  { %v1395_v5 = vpop.f32.mrf.mxu1 }
 0x555   :  { %v1398_v42 = vpop.f32.mrf.mxu1 }
 0x5cd   :  { %v1344_v29 = vpop.f32.mrf.mxu3  ;;  %v1324_v19 = vpop.f32.mrf.mxu2 }
 0x5ce   :  { %1369 = vmatpush.msrb.mxu0 %v1344_v29 }
 0x5d0   :  { %1370 = vmatpush.msrb.mxu0 %v1303_v4 }
 0x5d2   :  { %1371 = vmatpush.msrb.mxu0 %v1324_v19 }
 0x5d3   :  { %1622 = vmatmul.msk.f32.vlgmr.msrb.gmra.mxu0 %vm1352_vm11, %v37_v33 }
 0x5d4   :  { %1465 = vmatpush.msra.mxu0 %v1398_v42 }
 0x5d6   :  { %1466 = vmatpush.msra.mxu0 %v1395_v5 }
 0x5db   :  { %1627 = vmatmul.msk.f32.vlgmr.msra.gmra.mxu0 %vm1192_vm5, %v44_v8 }
 0x650   :  { %v1373_v6 = vpop.f32.mrf.mxu0 }
 0x651   :  { %v1374_v36 = vadd.f32 %v1373_v6, %v1350_v28 }
 0x653   :  { %v1376_v40 = vmax.f32 %v1374_v36, 0.0 }
 0x655   :  { %v1377_v7 = vadd.f32 %v1376_v40, %v1303_v4 }
 0x657   :  { %1625 = vmatmul.msk.f32.vlgmr.msrb.gmra.mxu2 %vm1192_vm5, %v1377_v7 }
 0x658   :  { %v1468_v22 = vpop.f32.mrf.mxu0 }
 0x6da   :  { %v1421_v11 = vpop.f32.mrf.mxu2 }
 0x6db   :  { %1443 = vmatpush.msrb.mxu3 %v1421_v11 }
 0x6dc   :  { %1626 = vmatmul.msk.f32.vlgmr.msrb.gmra.mxu3 %vm1424_vm12, %v45_v9 }
 0x75f   :  { %v1445_v1 = vpop.f32.mrf.mxu3 }
 0x760   :  { %v1469_v3 = vadd.f32 %v1468_v22, %v1445_v1 }
 0x762   :  { %v1476_v41 = vadd.f32 %v1474_v37, %v1469_v3 }
 0x764   :  { %v1478_v14 = vsel %vm1477_vm13, %v1476_v41, -inf }
 0x765   :  { %v1479_v32 = vrot.slane %v1478_v14, 4 }
 0x767   :  { %v1480_v12 = vmax.f32 %v1478_v14, %v1479_v32 }
 0x769   :  { %v1481_v30 = vrot.slane %v1480_v12, 2 }
 0x76b   :  { %v1482_v15 = vmax.f32 %v1480_v12, %v1481_v30 }
 0x76d   :  { %v1483_v13 = vrot.slane %v1482_v15, 1 }
 0x76f   :  { %v1484_v18 = vmax.f32 %v1482_v15, %v1483_v13 }
 0x771   :  { %v1485_v31 = vsub.f32 %v1476_v41, %v1484_v18 }
 0x773   :  { %v1486_v23 = vmul.f32 1.442695, %v1485_v31 }
 0x775   :  { %1721 = vpow2.f32 %v1486_v23 }
 0x77b   :  { %v1722_v26 = vpop.eup %1721 }
 0x77c   :  { %v1488_v21 = vsel %vm1477_vm13, %v1722_v26, 0.0 }
 0x77d   :  { %v1489_v10 = vrot.slane %v1488_v21, 4 }
 0x77f   :  { %v1490_v16 = vadd.f32 %v1489_v10, %v1488_v21 }
 0x781   :  { %v1491_v57 = vrot.slane %v1490_v16, 2 }
 0x783   :  { %v1492_v34 = vadd.f32 %v1491_v57, %v1490_v16 }
 0x785   :  { %v1493_v38 = vrot.slane %v1492_v34, 1 }
 0x787   :  { %v1494_v39 = vadd.f32 %v1493_v38, %v1492_v34 }
 0x789   :  { %1723 = vlog2.f32 %v1494_v39 }
 0x78f   :  { %v1724_v43 = vpop.eup %1723 }
 0x790   :  { %v1496_v44 = vmul.f32 0.6931472, %v1724_v43 }
 0x792   :  { %v1497_v47 = vadd.f32 %v1496_v44, %v1484_v18 }
 0x794   :  { %v1498_v45 = vsub.f32 %v1476_v41, %v1497_v47 }
 0x796   :  { %1499 = vst.msk [vmem:[%s2630_s5] sm:$0xf] %vm1477_vm13, %v1498_v45 }

</bundles_post_ra>
